<compile_context>
chip_gen: v7x
topology: tpu7x:2x2x1
jax: 0.10.0
libtpu: 0.0.40
codegen_flags: <defaults>
</compile_context>

<pallas_src>
import jax
import jax.numpy as jnp
from jax import lax
from jax.experimental import pallas as pl
from jax.experimental.pallas import tpu as pltpu

EPS = 1e-5  # PyTorch BatchNorm2d default


def _make_kernel(num_convs, M, L):
    """Fused (conv3x3 -> BN(train) -> ReLU) x num_convs over (M, L) slabs."""

    def kernel(*refs):
        x_ref, avg_ref, mup_ref, mdn_ref = refs[:4]
        layer_refs = refs[4:4 + 3 * num_convs]   # per layer: Wrow, gamma_lane, beta_lane
        o_ref = refs[4 + 3 * num_convs]          # (M, L)
        act_ref = refs[5 + 3 * num_convs]        # (M, L) VMEM scratch (inter-layer acts)

        avg = avg_ref[...]        # (L, L): x @ avg -> per-channel mean, lane-broadcast
        m_up = mup_ref[...]       # (M, 1): 1.0 where the row above exists (h != 0)
        m_dn = mdn_ref[...]       # (M, 1): 1.0 where the row below exists (h != H-1)

        for l in range(num_convs):
            w_ref = layer_refs[3 * l + 0]    # (3, L, L) block-tridiagonal row-tap weights
            g_ref = layer_refs[3 * l + 1]    # (1, L) gamma broadcast to lanes
            b_ref = layer_refs[3 * l + 2]    # (1, L) beta broadcast to lanes

            src = x_ref if l == 0 else act_ref
            a0 = src[...]                                     # (M, L) f32

            # dy = -1 / +1 row taps: sublane roll (XLU) + boundary-row mask (VPU).
            # roll(x, s)[r] = x[(r - s) % M]; cross-image bleed rows are exactly
            # the masked (out-of-bounds) rows, so flattening N*H is safe.
            a_up = pltpu.roll(a0, shift=1, axis=0) * m_up       # row r <- row r-1
            a_dn = pltpu.roll(a0, shift=M - 1, axis=0) * m_dn   # row r <- row r+1

            # 3x3 conv == 3 MXU matmuls; dx shifts are baked into Wrow host-side.
            acc = jnp.dot(a_up, w_ref[0], preferred_element_type=jnp.float32)
            acc = acc + jnp.dot(a0, w_ref[1], preferred_element_type=jnp.float32)
            acc = acc + jnp.dot(a_dn, w_ref[2], preferred_element_type=jnp.float32)

            # BatchNorm2d (training mode: batch mean, biased variance) + ReLU as
            # one FMA pass.  mean / E[x^2] come out lane-broadcast directly.
            mean = jnp.sum(jnp.dot(acc, avg, preferred_element_type=jnp.float32),
                           axis=0, keepdims=True)               # (1, L)
            ex2 = jnp.sum(jnp.dot(acc * acc, avg, preferred_element_type=jnp.float32),
                          axis=0, keepdims=True)                # (1, L)
            var = ex2 - mean * mean      # fused variance; fine in f32 at O(1) scale
            scale = g_ref[...] * lax.rsqrt(var + EPS)           # rsqrt -> EUP slot
            shift = b_ref[...] - mean * scale
            y = jnp.maximum(acc * scale + shift, 0.0)

            # Dense, unmasked, full-lane writeback (scratch or final output).
            dst = o_ref if l == num_convs - 1 else act_ref
            dst[...] = y

    return kernel


def conv_bn_relu_stack(x_nhwc, params):
    """Fused (Conv3x3 pad=1 -> BN(train) -> ReLU) x len(params); NHWC in/out (Cout ch)."""
    N, H, W, Cin = x_nhwc.shape
    num_convs = len(params)
    Cout = params[0][0].shape[-1]
    Cmax = max(Cin, Cout)
    L = W * Cmax                 # lane width of every activation slab (128 for the demo)
    M = N * H
    count = N * H * W            # BN reduction size

    # Input: channel-pad to Cmax, then flatten (W, C) onto the lane axis —
    # a free metadata reshape of the contiguous NHWC array.
    x_p = x_nhwc.astype(jnp.float32)
    if Cin < Cmax:
        x_p = jnp.pad(x_p, ((0, 0), (0, 0), (0, 0), (0, Cmax - Cin)))
    x2d = x_p.reshape(M, L)

    # Channel-class averaging matrix: (v @ avg)[q] = mean over lanes p with
    # p % Cmax == q % Cmax  (per-channel mean already broadcast back to lanes).
    cls = jnp.arange(L, dtype=jnp.int32) % Cmax
    avg = (cls[:, None] == cls[None, :]).astype(jnp.float32) / float(count)

    # Height-boundary keep-masks for the two sublane-rolled row taps.
    h_idx = jnp.arange(M, dtype=jnp.int32) % H
    m_up = (h_idx != 0).astype(jnp.float32).reshape(M, 1)
    m_dn = (h_idx != H - 1).astype(jnp.float32).reshape(M, 1)

    inputs = [x2d, avg, m_up, m_dn]
    in_specs = [
        pl.BlockSpec((M, L), lambda i: (0, 0)),
        pl.BlockSpec((L, L), lambda i: (0, 0)),
        pl.BlockSpec((M, 1), lambda i: (0, 0)),
        pl.BlockSpec((M, 1), lambda i: (0, 0)),
    ]

    # Per layer: fold the dx (width) shifts into block-tridiagonal lane-space
    # weights Wrow[kh] = sum_kw kron(eye(W, k=1-kw), w[kh, kw])  -> (L, L),
    # and pre-broadcast gamma/beta to the lane layout (host-side, one-off).
    for (w, _bias, gamma, beta) in params:   # conv bias: exactly cancelled by BN mean
        cin_l = w.shape[2]
        wp = jnp.pad(w.astype(jnp.float32),
                     ((0, 0), (0, 0), (0, Cmax - cin_l), (0, Cmax - Cout)))
        rows = []
        for kh in range(3):
            blk = jnp.zeros((L, L), jnp.float32)
            for kw in range(3):
                blk = blk + jnp.kron(jnp.eye(W, k=1 - kw, dtype=jnp.float32), wp[kh, kw])
            rows.append(blk)
        w_row = jnp.stack(rows)                                           # (3, L, L)
        g_lane = jnp.tile(jnp.pad(gamma.astype(jnp.float32), (0, Cmax - Cout)), W)
        b_lane = jnp.tile(jnp.pad(beta.astype(jnp.float32), (0, Cmax - Cout)), W)
        inputs += [w_row, g_lane.reshape(1, L), b_lane.reshape(1, L)]
        in_specs += [
            pl.BlockSpec((3, L, L), lambda i: (0, 0, 0)),
            pl.BlockSpec((1, L), lambda i: (0, 0)),
            pl.BlockSpec((1, L), lambda i: (0, 0)),
        ]

    kernel = _make_kernel(num_convs, M, L)
    y2d = pl.pallas_call(
        kernel,
        out_shape=jax.ShapeDtypeStruct((M, L), jnp.float32),
        grid=(1,),
        in_specs=in_specs,
        out_specs=pl.BlockSpec((M, L), lambda i: (0, 0)),
        scratch_shapes=[pltpu.VMEM((M, L), jnp.float32)],
        compiler_params=pltpu.CompilerParams(dimension_semantics=("arbitrary",)),
    )(*inputs)

    # Strip channel padding (no-op when Cmax == Cout, as in the demo).
    return y2d.reshape(N, H, W, Cmax)[..., :Cout]


@jax.jit
def deeper_double_conv(x_nchw, params):
    """DeeperDoubleConv forward. x: (N, Cin, H, W) -> (N, Cout, H, W), float32."""
    x = jnp.transpose(x_nchw, (0, 2, 3, 1)).astype(jnp.float32)  # NCHW -> NHWC
    y = conv_bn_relu_stack(x, params)
    return jnp.transpose(y, (0, 3, 1, 2))                        # NHWC -> NCHW


def _reference_forward(x_nchw, params):
    """Pure-JAX f32 reference (includes the conv bias) for a sanity check."""
    y = x_nchw.astype(jnp.float32)
    for (w, b, gamma, beta) in params:
        y = lax.conv_general_dilated(
            y, w, window_strides=(1, 1), padding=((1, 1), (1, 1)),
            dimension_numbers=("NCHW", "HWIO", "NCHW"))
        y = y + b.reshape(1, -1, 1, 1)
        mean = jnp.mean(y, axis=(0, 2, 3), keepdims=True)
        var = jnp.mean((y - mean) ** 2, axis=(0, 2, 3), keepdims=True)
        y = gamma.reshape(1, -1, 1, 1) * (y - mean) * lax.rsqrt(var + EPS) \
            + beta.reshape(1, -1, 1, 1)
        y = jnp.maximum(y, 0.0)
    return y


if __name__ == "__main__":
    key = jax.random.PRNGKey(0)
    N, Cin, H, W = 2, 4, 16, 16
    Cout, num_convs = 8, 3

    keys = jax.random.split(key, 1 + 2 * num_convs)
    x = jax.random.normal(keys[0], (N, Cin, H, W), jnp.float32)

    # Deterministic synthetic parameters (Conv weight in HWIO + bias; BN gamma=1,
    # beta=0, matching PyTorch BatchNorm2d affine init).
    params = []
    cin = Cin
    for i in range(num_convs):
        w = 0.1 * jax.random.normal(keys[1 + 2 * i], (3, 3, cin, Cout), jnp.float32)
        b = 0.1 * jax.random.normal(keys[2 + 2 * i], (Cout,), jnp.float32)
        gamma = jnp.ones((Cout,), jnp.float32)
        beta = jnp.zeros((Cout,), jnp.float32)
        params.append((w, b, gamma, beta))
        cin = Cout

    y = deeper_double_conv(x, params)
    jax.block_until_ready(y)
    assert y.shape == (N, Cout, H, W), y.shape
    assert bool(jnp.all(y >= 0.0))  # ReLU output

    # Sanity check vs. a pure-JAX f32 reference.  Kernel uses f32 operands, so
    # the only differences are matmul/conv default-precision rounding and the
    # exact (bias + BN-mean) cancellation.
    y_ref = _reference_forward(x, params)
    max_err = float(jnp.max(jnp.abs(y - y_ref)))
    assert bool(jnp.allclose(y, y_ref, rtol=5e-2, atol=5e-2)), max_err

    print("KERNEL_OK")
</pallas_src>

<mosaic_0001>
module attributes {stable_mosaic.version = 11 : i64} {
  func.func @kernel(%arg0: i32, %arg1: memref<32x128xf32, #tpu.memory_space<vmem>>, %arg2: memref<128x128xf32, #tpu.memory_space<vmem>>, %arg3: memref<32x1xf32, #tpu.memory_space<vmem>>, %arg4: memref<32x1xf32, #tpu.memory_space<vmem>>, %arg5: memref<3x128x128xf32, #tpu.memory_space<vmem>>, %arg6: memref<1x128xf32, #tpu.memory_space<vmem>>, %arg7: memref<1x128xf32, #tpu.memory_space<vmem>>, %arg8: memref<3x128x128xf32, #tpu.memory_space<vmem>>, %arg9: memref<1x128xf32, #tpu.memory_space<vmem>>, %arg10: memref<1x128xf32, #tpu.memory_space<vmem>>, %arg11: memref<3x128x128xf32, #tpu.memory_space<vmem>>, %arg12: memref<1x128xf32, #tpu.memory_space<vmem>>, %arg13: memref<1x128xf32, #tpu.memory_space<vmem>>, %arg14: memref<32x128xf32, #tpu.memory_space<vmem>>, %arg15: memref<32x128xf32, #tpu.memory_space<vmem>>) attributes {dimension_semantics = [#tpu.dimension_semantics<arbitrary>], iteration_bounds = array<i64: 1>, scalar_prefetch = 0 : i64, scratch_operands = 1 : i64, tpu.core_type = #tpu.core_type<tc>, window_params = [{pipeline_mode = #tpu.pipeline_mode<synchronous>, transform_indices = @transform_0, window_bounds = array<i64: 32, 128>}, {pipeline_mode = #tpu.pipeline_mode<synchronous>, transform_indices = @transform_1, window_bounds = array<i64: 128, 128>}, {pipeline_mode = #tpu.pipeline_mode<synchronous>, transform_indices = @transform_2, window_bounds = array<i64: 32, 1>}, {pipeline_mode = #tpu.pipeline_mode<synchronous>, transform_indices = @transform_3, window_bounds = array<i64: 32, 1>}, {pipeline_mode = #tpu.pipeline_mode<synchronous>, transform_indices = @transform_4, window_bounds = array<i64: 3, 128, 128>}, {pipeline_mode = #tpu.pipeline_mode<synchronous>, transform_indices = @transform_5, window_bounds = array<i64: 1, 128>}, {pipeline_mode = #tpu.pipeline_mode<synchronous>, transform_indices = @transform_6, window_bounds = array<i64: 1, 128>}, {pipeline_mode = #tpu.pipeline_mode<synchronous>, transform_indices = @transform_7, window_bounds = array<i64: 3, 128, 128>}, {pipeline_mode = #tpu.pipeline_mode<synchronous>, transform_indices = @transform_8, window_bounds = array<i64: 1, 128>}, {pipeline_mode = #tpu.pipeline_mode<synchronous>, transform_indices = @transform_9, window_bounds = array<i64: 1, 128>}, {pipeline_mode = #tpu.pipeline_mode<synchronous>, transform_indices = @transform_10, window_bounds = array<i64: 3, 128, 128>}, {pipeline_mode = #tpu.pipeline_mode<synchronous>, transform_indices = @transform_11, window_bounds = array<i64: 1, 128>}, {pipeline_mode = #tpu.pipeline_mode<synchronous>, transform_indices = @transform_12, window_bounds = array<i64: 1, 128>}, {pipeline_mode = #tpu.pipeline_mode<synchronous>, transform_indices = @transform_13, window_bounds = array<i64: 32, 128>}]} {
    %c0 = arith.constant 0 : index
    %c0_0 = arith.constant 0 : index
    %0 = vector.load %arg2[%c0, %c0_0] : memref<128x128xf32, #tpu.memory_space<vmem>>, vector<128x128xf32>
    %c0_1 = arith.constant 0 : index
    %c0_2 = arith.constant 0 : index
    %1 = vector.load %arg3[%c0_1, %c0_2] : memref<32x1xf32, #tpu.memory_space<vmem>>, vector<32x1xf32>
    %c0_3 = arith.constant 0 : index
    %c0_4 = arith.constant 0 : index
    %2 = vector.load %arg4[%c0_3, %c0_4] : memref<32x1xf32, #tpu.memory_space<vmem>>, vector<32x1xf32>
    %c0_5 = arith.constant 0 : index
    %c0_6 = arith.constant 0 : index
    %3 = vector.load %arg1[%c0_5, %c0_6] : memref<32x128xf32, #tpu.memory_space<vmem>>, vector<32x128xf32>
    %c1_i32 = arith.constant 1 : i32
    %4 = tpu.dynamic_rotate %3 by %c1_i32 dim 0 : vector<32x128xf32>, i32 -> vector<32x128xf32>
    %5 = vector.broadcast %1 : vector<32x1xf32> to vector<32x128xf32>
    %6 = arith.mulf %4, %5 : vector<32x128xf32>
    %c31_i32 = arith.constant 31 : i32
    %7 = tpu.dynamic_rotate %3 by %c31_i32 dim 0 : vector<32x128xf32>, i32 -> vector<32x128xf32>
    %8 = vector.broadcast %2 : vector<32x1xf32> to vector<32x128xf32>
    %9 = arith.mulf %7, %8 : vector<32x128xf32>
    %c0_7 = arith.constant 0 : index
    %c0_8 = arith.constant 0 : index
    %c0_9 = arith.constant 0 : index
    %10 = vector.load %arg5[%c0_7, %c0_8, %c0_9] : memref<3x128x128xf32, #tpu.memory_space<vmem>>, vector<1x128x128xf32>
    %11 = vector.shape_cast %10 : vector<1x128x128xf32> to vector<128x128xf32>
    %cst = arith.constant dense<0.000000e+00> : vector<32x128xf32>
    %12 = tpu.matmul %6, %11, %cst {dimension_numbers = #tpu.dot_dimension_numbers<[1], [0], [0], [1], [0, 0, 1, 1], [], []>} : vector<32x128xf32>, vector<128x128xf32>, vector<32x128xf32> -> vector<32x128xf32>
    %c1 = arith.constant 1 : index
    %c0_10 = arith.constant 0 : index
    %c0_11 = arith.constant 0 : index
    %13 = vector.load %arg5[%c1, %c0_10, %c0_11] : memref<3x128x128xf32, #tpu.memory_space<vmem>>, vector<1x128x128xf32>
    %14 = vector.shape_cast %13 : vector<1x128x128xf32> to vector<128x128xf32>
    %cst_12 = arith.constant dense<0.000000e+00> : vector<32x128xf32>
    %15 = tpu.matmul %3, %14, %cst_12 {dimension_numbers = #tpu.dot_dimension_numbers<[1], [0], [0], [1], [0, 0, 1, 1], [], []>} : vector<32x128xf32>, vector<128x128xf32>, vector<32x128xf32> -> vector<32x128xf32>
    %16 = arith.addf %12, %15 : vector<32x128xf32>
    %c2 = arith.constant 2 : index
    %c0_13 = arith.constant 0 : index
    %c0_14 = arith.constant 0 : index
    %17 = vector.load %arg5[%c2, %c0_13, %c0_14] : memref<3x128x128xf32, #tpu.memory_space<vmem>>, vector<1x128x128xf32>
    %18 = vector.shape_cast %17 : vector<1x128x128xf32> to vector<128x128xf32>
    %cst_15 = arith.constant dense<0.000000e+00> : vector<32x128xf32>
    %19 = tpu.matmul %9, %18, %cst_15 {dimension_numbers = #tpu.dot_dimension_numbers<[1], [0], [0], [1], [0, 0, 1, 1], [], []>} : vector<32x128xf32>, vector<128x128xf32>, vector<32x128xf32> -> vector<32x128xf32>
    %20 = arith.addf %16, %19 : vector<32x128xf32>
    %cst_16 = arith.constant dense<0.000000e+00> : vector<32x128xf32>
    %21 = tpu.matmul %20, %0, %cst_16 {dimension_numbers = #tpu.dot_dimension_numbers<[1], [0], [0], [1], [0, 0, 1, 1], [], []>} : vector<32x128xf32>, vector<128x128xf32>, vector<32x128xf32> -> vector<32x128xf32>
    %cst_17 = arith.constant dense<0.000000e+00> : vector<128xf32>
    %22 = vector.multi_reduction <add>, %21, %cst_17 [0] : vector<32x128xf32> to vector<128xf32>
    %23 = vector.shape_cast %22 : vector<128xf32> to vector<1x128xf32>
    %24 = arith.mulf %20, %20 : vector<32x128xf32>
    %cst_18 = arith.constant dense<0.000000e+00> : vector<32x128xf32>
    %25 = tpu.matmul %24, %0, %cst_18 {dimension_numbers = #tpu.dot_dimension_numbers<[1], [0], [0], [1], [0, 0, 1, 1], [], []>} : vector<32x128xf32>, vector<128x128xf32>, vector<32x128xf32> -> vector<32x128xf32>
    %cst_19 = arith.constant dense<0.000000e+00> : vector<128xf32>
    %26 = vector.multi_reduction <add>, %25, %cst_19 [0] : vector<32x128xf32> to vector<128xf32>
    %27 = vector.shape_cast %26 : vector<128xf32> to vector<1x128xf32>
    %28 = arith.mulf %23, %23 : vector<1x128xf32>
    %29 = arith.subf %27, %28 : vector<1x128xf32>
    %c0_20 = arith.constant 0 : index
    %c0_21 = arith.constant 0 : index
    %30 = vector.load %arg6[%c0_20, %c0_21] : memref<1x128xf32, #tpu.memory_space<vmem>>, vector<1x128xf32>
    %cst_22 = arith.constant 9.99999974E-6 : f32
    %31 = vector.broadcast %cst_22 : f32 to vector<1x128xf32>
    %32 = arith.addf %29, %31 : vector<1x128xf32>
    %33 = math.rsqrt %32 : vector<1x128xf32>
    %34 = arith.mulf %30, %33 : vector<1x128xf32>
    %c0_23 = arith.constant 0 : index
    %c0_24 = arith.constant 0 : index
    %35 = vector.load %arg7[%c0_23, %c0_24] : memref<1x128xf32, #tpu.memory_space<vmem>>, vector<1x128xf32>
    %36 = arith.mulf %23, %34 : vector<1x128xf32>
    %37 = arith.subf %35, %36 : vector<1x128xf32>
    %38 = vector.broadcast %34 : vector<1x128xf32> to vector<32x128xf32>
    %39 = arith.mulf %20, %38 : vector<32x128xf32>
    %40 = vector.broadcast %37 : vector<1x128xf32> to vector<32x128xf32>
    %41 = arith.addf %39, %40 : vector<32x128xf32>
    %cst_25 = arith.constant 0.000000e+00 : f32
    %42 = vector.broadcast %cst_25 : f32 to vector<32x128xf32>
    %43 = arith.maximumf %41, %42 : vector<32x128xf32>
    %c0_26 = arith.constant 0 : index
    %c0_27 = arith.constant 0 : index
    %44 = vector.load %arg15[%c0_26, %c0_27] : memref<32x128xf32, #tpu.memory_space<vmem>>, vector<32x128xf32>
    tpu.vector_store %arg15[%c0_26, %c0_27], %43 {strides = array<i32>} : memref<32x128xf32, #tpu.memory_space<vmem>>, vector<32x128xf32>,
    %c0_28 = arith.constant 0 : index
    %c0_29 = arith.constant 0 : index
    %45 = vector.load %arg15[%c0_28, %c0_29] : memref<32x128xf32, #tpu.memory_space<vmem>>, vector<32x128xf32>
    %c1_i32_30 = arith.constant 1 : i32
    %46 = tpu.dynamic_rotate %45 by %c1_i32_30 dim 0 : vector<32x128xf32>, i32 -> vector<32x128xf32>
    %47 = vector.broadcast %1 : vector<32x1xf32> to vector<32x128xf32>
    %48 = arith.mulf %46, %47 : vector<32x128xf32>
    %c31_i32_31 = arith.constant 31 : i32
    %49 = tpu.dynamic_rotate %45 by %c31_i32_31 dim 0 : vector<32x128xf32>, i32 -> vector<32x128xf32>
    %50 = vector.broadcast %2 : vector<32x1xf32> to vector<32x128xf32>
    %51 = arith.mulf %49, %50 : vector<32x128xf32>
    %c0_32 = arith.constant 0 : index
    %c0_33 = arith.constant 0 : index
    %c0_34 = arith.constant 0 : index
    %52 = vector.load %arg8[%c0_32, %c0_33, %c0_34] : memref<3x128x128xf32, #tpu.memory_space<vmem>>, vector<1x128x128xf32>
    %53 = vector.shape_cast %52 : vector<1x128x128xf32> to vector<128x128xf32>
    %cst_35 = arith.constant dense<0.000000e+00> : vector<32x128xf32>
    %54 = tpu.matmul %48, %53, %cst_35 {dimension_numbers = #tpu.dot_dimension_numbers<[1], [0], [0], [1], [0, 0, 1, 1], [], []>} : vector<32x128xf32>, vector<128x128xf32>, vector<32x128xf32> -> vector<32x128xf32>
    %c1_36 = arith.constant 1 : index
    %c0_37 = arith.constant 0 : index
    %c0_38 = arith.constant 0 : index
    %55 = vector.load %arg8[%c1_36, %c0_37, %c0_38] : memref<3x128x128xf32, #tpu.memory_space<vmem>>, vector<1x128x128xf32>
    %56 = vector.shape_cast %55 : vector<1x128x128xf32> to vector<128x128xf32>
    %cst_39 = arith.constant dense<0.000000e+00> : vector<32x128xf32>
    %57 = tpu.matmul %45, %56, %cst_39 {dimension_numbers = #tpu.dot_dimension_numbers<[1], [0], [0], [1], [0, 0, 1, 1], [], []>} : vector<32x128xf32>, vector<128x128xf32>, vector<32x128xf32> -> vector<32x128xf32>
    %58 = arith.addf %54, %57 : vector<32x128xf32>
    %c2_40 = arith.constant 2 : index
    %c0_41 = arith.constant 0 : index
    %c0_42 = arith.constant 0 : index
    %59 = vector.load %arg8[%c2_40, %c0_41, %c0_42] : memref<3x128x128xf32, #tpu.memory_space<vmem>>, vector<1x128x128xf32>
    %60 = vector.shape_cast %59 : vector<1x128x128xf32> to vector<128x128xf32>
    %cst_43 = arith.constant dense<0.000000e+00> : vector<32x128xf32>
    %61 = tpu.matmul %51, %60, %cst_43 {dimension_numbers = #tpu.dot_dimension_numbers<[1], [0], [0], [1], [0, 0, 1, 1], [], []>} : vector<32x128xf32>, vector<128x128xf32>, vector<32x128xf32> -> vector<32x128xf32>
    %62 = arith.addf %58, %61 : vector<32x128xf32>
    %cst_44 = arith.constant dense<0.000000e+00> : vector<32x128xf32>
    %63 = tpu.matmul %62, %0, %cst_44 {dimension_numbers = #tpu.dot_dimension_numbers<[1], [0], [0], [1], [0, 0, 1, 1], [], []>} : vector<32x128xf32>, vector<128x128xf32>, vector<32x128xf32> -> vector<32x128xf32>
    %cst_45 = arith.constant dense<0.000000e+00> : vector<128xf32>
    %64 = vector.multi_reduction <add>, %63, %cst_45 [0] : vector<32x128xf32> to vector<128xf32>
    %65 = vector.shape_cast %64 : vector<128xf32> to vector<1x128xf32>
    %66 = arith.mulf %62, %62 : vector<32x128xf32>
    %cst_46 = arith.constant dense<0.000000e+00> : vector<32x128xf32>
    %67 = tpu.matmul %66, %0, %cst_46 {dimension_numbers = #tpu.dot_dimension_numbers<[1], [0], [0], [1], [0, 0, 1, 1], [], []>} : vector<32x128xf32>, vector<128x128xf32>, vector<32x128xf32> -> vector<32x128xf32>
    %cst_47 = arith.constant dense<0.000000e+00> : vector<128xf32>
    %68 = vector.multi_reduction <add>, %67, %cst_47 [0] : vector<32x128xf32> to vector<128xf32>
    %69 = vector.shape_cast %68 : vector<128xf32> to vector<1x128xf32>
    %70 = arith.mulf %65, %65 : vector<1x128xf32>
    %71 = arith.subf %69, %70 : vector<1x128xf32>
    %c0_48 = arith.constant 0 : index
    %c0_49 = arith.constant 0 : index
    %72 = vector.load %arg9[%c0_48, %c0_49] : memref<1x128xf32, #tpu.memory_space<vmem>>, vector<1x128xf32>
    %cst_50 = arith.constant 9.99999974E-6 : f32
    %73 = vector.broadcast %cst_50 : f32 to vector<1x128xf32>
    %74 = arith.addf %71, %73 : vector<1x128xf32>
    %75 = math.rsqrt %74 : vector<1x128xf32>
    %76 = arith.mulf %72, %75 : vector<1x128xf32>
    %c0_51 = arith.constant 0 : index
    %c0_52 = arith.constant 0 : index
    %77 = vector.load %arg10[%c0_51, %c0_52] : memref<1x128xf32, #tpu.memory_space<vmem>>, vector<1x128xf32>
    %78 = arith.mulf %65, %76 : vector<1x128xf32>
    %79 = arith.subf %77, %78 : vector<1x128xf32>
    %80 = vector.broadcast %76 : vector<1x128xf32> to vector<32x128xf32>
    %81 = arith.mulf %62, %80 : vector<32x128xf32>
    %82 = vector.broadcast %79 : vector<1x128xf32> to vector<32x128xf32>
    %83 = arith.addf %81, %82 : vector<32x128xf32>
    %cst_53 = arith.constant 0.000000e+00 : f32
    %84 = vector.broadcast %cst_53 : f32 to vector<32x128xf32>
    %85 = arith.maximumf %83, %84 : vector<32x128xf32>
    %c0_54 = arith.constant 0 : index
    %c0_55 = arith.constant 0 : index
    %86 = vector.load %arg15[%c0_54, %c0_55] : memref<32x128xf32, #tpu.memory_space<vmem>>, vector<32x128xf32>
    tpu.vector_store %arg15[%c0_54, %c0_55], %85 {strides = array<i32>} : memref<32x128xf32, #tpu.memory_space<vmem>>, vector<32x128xf32>,
    %c0_56 = arith.constant 0 : index
    %c0_57 = arith.constant 0 : index
    %87 = vector.load %arg15[%c0_56, %c0_57] : memref<32x128xf32, #tpu.memory_space<vmem>>, vector<32x128xf32>
    %c1_i32_58 = arith.constant 1 : i32
    %88 = tpu.dynamic_rotate %87 by %c1_i32_58 dim 0 : vector<32x128xf32>, i32 -> vector<32x128xf32>
    %89 = vector.broadcast %1 : vector<32x1xf32> to vector<32x128xf32>
    %90 = arith.mulf %88, %89 : vector<32x128xf32>
    %c31_i32_59 = arith.constant 31 : i32
    %91 = tpu.dynamic_rotate %87 by %c31_i32_59 dim 0 : vector<32x128xf32>, i32 -> vector<32x128xf32>
    %92 = vector.broadcast %2 : vector<32x1xf32> to vector<32x128xf32>
    %93 = arith.mulf %91, %92 : vector<32x128xf32>
    %c0_60 = arith.constant 0 : index
    %c0_61 = arith.constant 0 : index
    %c0_62 = arith.constant 0 : index
    %94 = vector.load %arg11[%c0_60, %c0_61, %c0_62] : memref<3x128x128xf32, #tpu.memory_space<vmem>>, vector<1x128x128xf32>
    %95 = vector.shape_cast %94 : vector<1x128x128xf32> to vector<128x128xf32>
    %cst_63 = arith.constant dense<0.000000e+00> : vector<32x128xf32>
    %96 = tpu.matmul %90, %95, %cst_63 {dimension_numbers = #tpu.dot_dimension_numbers<[1], [0], [0], [1], [0, 0, 1, 1], [], []>} : vector<32x128xf32>, vector<128x128xf32>, vector<32x128xf32> -> vector<32x128xf32>
    %c1_64 = arith.constant 1 : index
    %c0_65 = arith.constant 0 : index
    %c0_66 = arith.constant 0 : index
    %97 = vector.load %arg11[%c1_64, %c0_65, %c0_66] : memref<3x128x128xf32, #tpu.memory_space<vmem>>, vector<1x128x128xf32>
    %98 = vector.shape_cast %97 : vector<1x128x128xf32> to vector<128x128xf32>
    %cst_67 = arith.constant dense<0.000000e+00> : vector<32x128xf32>
    %99 = tpu.matmul %87, %98, %cst_67 {dimension_numbers = #tpu.dot_dimension_numbers<[1], [0], [0], [1], [0, 0, 1, 1], [], []>} : vector<32x128xf32>, vector<128x128xf32>, vector<32x128xf32> -> vector<32x128xf32>
    %100 = arith.addf %96, %99 : vector<32x128xf32>
    %c2_68 = arith.constant 2 : index
    %c0_69 = arith.constant 0 : index
    %c0_70 = arith.constant 0 : index
    %101 = vector.load %arg11[%c2_68, %c0_69, %c0_70] : memref<3x128x128xf32, #tpu.memory_space<vmem>>, vector<1x128x128xf32>
    %102 = vector.shape_cast %101 : vector<1x128x128xf32> to vector<128x128xf32>
    %cst_71 = arith.constant dense<0.000000e+00> : vector<32x128xf32>
    %103 = tpu.matmul %93, %102, %cst_71 {dimension_numbers = #tpu.dot_dimension_numbers<[1], [0], [0], [1], [0, 0, 1, 1], [], []>} : vector<32x128xf32>, vector<128x128xf32>, vector<32x128xf32> -> vector<32x128xf32>
    %104 = arith.addf %100, %103 : vector<32x128xf32>
    %cst_72 = arith.constant dense<0.000000e+00> : vector<32x128xf32>
    %105 = tpu.matmul %104, %0, %cst_72 {dimension_numbers = #tpu.dot_dimension_numbers<[1], [0], [0], [1], [0, 0, 1, 1], [], []>} : vector<32x128xf32>, vector<128x128xf32>, vector<32x128xf32> -> vector<32x128xf32>
    %cst_73 = arith.constant dense<0.000000e+00> : vector<128xf32>
    %106 = vector.multi_reduction <add>, %105, %cst_73 [0] : vector<32x128xf32> to vector<128xf32>
    %107 = vector.shape_cast %106 : vector<128xf32> to vector<1x128xf32>
    %108 = arith.mulf %104, %104 : vector<32x128xf32>
    %cst_74 = arith.constant dense<0.000000e+00> : vector<32x128xf32>
    %109 = tpu.matmul %108, %0, %cst_74 {dimension_numbers = #tpu.dot_dimension_numbers<[1], [0], [0], [1], [0, 0, 1, 1], [], []>} : vector<32x128xf32>, vector<128x128xf32>, vector<32x128xf32> -> vector<32x128xf32>
    %cst_75 = arith.constant dense<0.000000e+00> : vector<128xf32>
    %110 = vector.multi_reduction <add>, %109, %cst_75 [0] : vector<32x128xf32> to vector<128xf32>
    %111 = vector.shape_cast %110 : vector<128xf32> to vector<1x128xf32>
    %112 = arith.mulf %107, %107 : vector<1x128xf32>
    %113 = arith.subf %111, %112 : vector<1x128xf32>
    %c0_76 = arith.constant 0 : index
    %c0_77 = arith.constant 0 : index
    %114 = vector.load %arg12[%c0_76, %c0_77] : memref<1x128xf32, #tpu.memory_space<vmem>>, vector<1x128xf32>
    %cst_78 = arith.constant 9.99999974E-6 : f32
    %115 = vector.broadcast %cst_78 : f32 to vector<1x128xf32>
    %116 = arith.addf %113, %115 : vector<1x128xf32>
    %117 = math.rsqrt %116 : vector<1x128xf32>
    %118 = arith.mulf %114, %117 : vector<1x128xf32>
    %c0_79 = arith.constant 0 : index
    %c0_80 = arith.constant 0 : index
    %119 = vector.load %arg13[%c0_79, %c0_80] : memref<1x128xf32, #tpu.memory_space<vmem>>, vector<1x128xf32>
    %120 = arith.mulf %107, %118 : vector<1x128xf32>
    %121 = arith.subf %119, %120 : vector<1x128xf32>
    %122 = vector.broadcast %118 : vector<1x128xf32> to vector<32x128xf32>
    %123 = arith.mulf %104, %122 : vector<32x128xf32>
    %124 = vector.broadcast %121 : vector<1x128xf32> to vector<32x128xf32>
    %125 = arith.addf %123, %124 : vector<32x128xf32>
    %cst_81 = arith.constant 0.000000e+00 : f32
    %126 = vector.broadcast %cst_81 : f32 to vector<32x128xf32>
    %127 = arith.maximumf %125, %126 : vector<32x128xf32>
    %c0_82 = arith.constant 0 : index
    %c0_83 = arith.constant 0 : index
    %128 = vector.load %arg14[%c0_82, %c0_83] : memref<32x128xf32, #tpu.memory_space<vmem>>, vector<32x128xf32>
    tpu.vector_store %arg14[%c0_82, %c0_83], %127 {strides = array<i32>} : memref<32x128xf32, #tpu.memory_space<vmem>>, vector<32x128xf32>,
    return
  }
  func.func @transform_0(%arg0: i32) -> (i32, i32) {
    %c0_i32 = arith.constant 0 : i32
    %c0_i32_0 = arith.constant 0 : i32
    %c0_i32_1 = arith.constant 0 : i32
    return %c0_i32, %c0_i32_0 : i32, i32
  }
  func.func @transform_1(%arg0: i32) -> (i32, i32) {
    %c0_i32 = arith.constant 0 : i32
    %c0_i32_0 = arith.constant 0 : i32
    %c0_i32_1 = arith.constant 0 : i32
    return %c0_i32, %c0_i32_0 : i32, i32
  }
  func.func @transform_2(%arg0: i32) -> (i32, i32) {
    %c0_i32 = arith.constant 0 : i32
    %c0_i32_0 = arith.constant 0 : i32
    %c0_i32_1 = arith.constant 0 : i32
    return %c0_i32, %c0_i32_0 : i32, i32
  }
  func.func @transform_3(%arg0: i32) -> (i32, i32) {
    %c0_i32 = arith.constant 0 : i32
    %c0_i32_0 = arith.constant 0 : i32
    %c0_i32_1 = arith.constant 0 : i32
    return %c0_i32, %c0_i32_0 : i32, i32
  }
  func.func @transform_4(%arg0: i32) -> (i32, i32, i32) {
    %c0_i32 = arith.constant 0 : i32
    %c0_i32_0 = arith.constant 0 : i32
    %c0_i32_1 = arith.constant 0 : i32
    %c0_i32_2 = arith.constant 0 : i32
    return %c0_i32, %c0_i32_0, %c0_i32_1 : i32, i32, i32
  }
  func.func @transform_5(%arg0: i32) -> (i32, i32) {
    %c0_i32 = arith.constant 0 : i32
    %c0_i32_0 = arith.constant 0 : i32
    %c0_i32_1 = arith.constant 0 : i32
    return %c0_i32, %c0_i32_0 : i32, i32
  }
  func.func @transform_6(%arg0: i32) -> (i32, i32) {
    %c0_i32 = arith.constant 0 : i32
    %c0_i32_0 = arith.constant 0 : i32
    %c0_i32_1 = arith.constant 0 : i32
    return %c0_i32, %c0_i32_0 : i32, i32
  }
  func.func @transform_7(%arg0: i32) -> (i32, i32, i32) {
    %c0_i32 = arith.constant 0 : i32
    %c0_i32_0 = arith.constant 0 : i32
    %c0_i32_1 = arith.constant 0 : i32
    %c0_i32_2 = arith.constant 0 : i32
    return %c0_i32, %c0_i32_0, %c0_i32_1 : i32, i32, i32
  }
  func.func @transform_8(%arg0: i32) -> (i32, i32) {
    %c0_i32 = arith.constant 0 : i32
    %c0_i32_0 = arith.constant 0 : i32
    %c0_i32_1 = arith.constant 0 : i32
    return %c0_i32, %c0_i32_0 : i32, i32
  }
  func.func @transform_9(%arg0: i32) -> (i32, i32) {
    %c0_i32 = arith.constant 0 : i32
    %c0_i32_0 = arith.constant 0 : i32
    %c0_i32_1 = arith.constant 0 : i32
    return %c0_i32, %c0_i32_0 : i32, i32
  }
  func.func @transform_10(%arg0: i32) -> (i32, i32, i32) {
    %c0_i32 = arith.constant 0 : i32
    %c0_i32_0 = arith.constant 0 : i32
    %c0_i32_1 = arith.constant 0 : i32
    %c0_i32_2 = arith.constant 0 : i32
    return %c0_i32, %c0_i32_0, %c0_i32_1 : i32, i32, i32
  }
  func.func @transform_11(%arg0: i32) -> (i32, i32) {
    %c0_i32 = arith.constant 0 : i32
    %c0_i32_0 = arith.constant 0 : i32
    %c0_i32_1 = arith.constant 0 : i32
    return %c0_i32, %c0_i32_0 : i32, i32
  }
  func.func @transform_12(%arg0: i32) -> (i32, i32) {
    %c0_i32 = arith.constant 0 : i32
    %c0_i32_0 = arith.constant 0 : i32
    %c0_i32_1 = arith.constant 0 : i32
    return %c0_i32, %c0_i32_0 : i32, i32
  }
  func.func @transform_13(%arg0: i32) -> (i32, i32) {
    %c0_i32 = arith.constant 0 : i32
    %c0_i32_0 = arith.constant 0 : i32
    %c0_i32_1 = arith.constant 0 : i32
    return %c0_i32, %c0_i32_0 : i32, i32
  }
}

</mosaic_0001>

<bundles_post_ra>
// kernel: tile.33
= control target key start
LH: loop header
LB: loop body
LE: loop exit
PB: predicated region body
PF: predicated region fallthrough
CT: control target
= control target key end

     0   :  { %s28_s0 = inlined_call_operand.vmem [shape: f32[8], index: 0, kind: input, shape index: {}]   ;;  %s29_s1 = inlined_call_operand.vmem [shape: f32[16,8], index: 1, kind: output, shape index: {}]  }
   0x1   :  { %v4_v0 = vld [vmem:[%s28_s0] ss:$0 sm:$0xff] }
   0x2   :  { %5 = vst [vmem:[%s29_s1] sm:$0xff] %v4_v0  ;;  %8 = vst [vmem:[%s29_s1 + $0x8] sm:$0xff] %v4_v0 }

// kernel: tile.38
= control target key start
LH: loop header
LB: loop body
LE: loop exit
PB: predicated region body
PF: predicated region fallthrough
CT: control target
= control target key end

     0   :  { %s131_s10 = smov 120   ;;  %s132_s11 = smov 104   ;;  %vm3_vm0 = vcmask 64512   ;;  %vm9_vm1 = vcmask 1048512   ;;  %vm15_vm2 = vcmask 982912   ;;  %vm21_vm3 = vcmask 917312   ;;  %s207_s0 = inlined_call_operand.vmem [shape: f32[16,8], index: 0, kind: input, shape index: {}]   ;;  %s208_s1 = inlined_call_operand.vmem [shape: f32[1,128], index: 1, kind: output, shape index: {}]  }
   0x1   :  { %v101_v0 = vld [vmem:[%s207_s0 + $0xf] sm:$0x1]   ;;  %v103_v1 = vld [vmem:[%s207_s0 + $0xd] sm:$0x1]   ;;  %v102_v2 = vld [vmem:[%s207_s0 + $0xe] sm:$0x1]  }
   0x2   :  { %7 = vrot.lane.b32.xlu0 %v101_v0, %s131_s10  ;;  %19 = vrot.lane.b32.xlu1 %v103_v1, %s132_s11  ;;  %v104_v3 = vld [vmem:[%s207_s0 + $0xc] sm:$0x1]   ;;  %s133_s16 = smov 112   ;;  %s134_s17 = smov 96   ;;  %v105_v4 = vld [vmem:[%s207_s0 + $0xb] sm:$0x1]  }
   0x3   :  { %v106_v5 = vld [vmem:[%s207_s0 + $0xa] sm:$0x1]   ;;  %v2_v6 = vld [vmem:[%s207_s0] sm:$0x1]   ;;  %s135_s24 = smov 88   ;;  %s136_s25 = smov 80  }
   0x4   :  { %4 = vst.msk [vmem:[#allocation0] sm:$0x1] %vm3_vm0, %v2_v6   ;;  %v107_v7 = vld [vmem:[%s207_s0 + $0x9] sm:$0x1]   ;;  %v108_v8 = vld [vmem:[%s207_s0 + $0x8] sm:$0x1]  }
   0x5   :  { %s137_s30 = smov 72   ;;  %s138_s2 = smov 64   ;;  %v109_v9 = vld [vmem:[%s207_s0 + $0x7] sm:$0x1]   ;;  %v110_v10 = vld [vmem:[%s207_s0 + $0x6] sm:$0x1]  }
   0x6   :  { %13 = vrot.lane.b32.xlu0 %v102_v2, %s133_s16  ;;  %25 = vrot.lane.b32.xlu1 %v104_v3, %s134_s17  ;;  %s139_s7 = smov 56   ;;  %s140_s8 = smov 48   ;;  %v111_v11 = vld [vmem:[%s207_s0 + $0x5] sm:$0x1]   ;;  %v112_v12 = vld [vmem:[%s207_s0 + $0x4] sm:$0x1]  }
   0x7   :  { %s141_s13 = smov 40   ;;  %s142_s14 = smov 32   ;;  %v113_v13 = vld [vmem:[%s207_s0 + $0x3] sm:$0x1]   ;;  %v114_v14 = vld [vmem:[%s207_s0 + $0x2] sm:$0x1]  }
   0x8   :  { %s143_s19 = smov 24   ;;  %s144_s20 = smov 16   ;;  %v115_v15 = vld [vmem:[%s207_s0 + $0x1] sm:$0x1]   ;;  %vm27_vm4 = vcmask 851712   ;;  %vm33_vm5 = vcmask 786112  }
   0x9   :  { %s145_s0 = smov 8   ;;  %vm39_vm6 = vcmask 720512   ;;  %vm45_vm7 = vcmask 654912   ;;  %vm51_vm8 = vcmask 589312   ;;  %vm57_vm9 = vcmask 523712  }
   0xa   :  { %31 = vrot.lane.b32.xlu0 %v105_v4, %s135_s24  ;;  %37 = vrot.lane.b32.xlu1 %v106_v5, %s136_s25  ;;  %vm63_vm10 = vcmask 458112   ;;  %vm69_vm11 = vcmask 392512   ;;  %vm75_vm12 = vcmask 326912   ;;  %vm81_vm13 = vcmask 261312  }
   0xb   :  { %vm87_vm14 = vcmask 195712   ;;  %vm93_vm15 = vcmask 130112  }
   0xe   :  { %43 = vrot.lane.b32.xlu0 %v107_v7, %s137_s30  ;;  %49 = vrot.lane.b32.xlu1 %v108_v8, %s138_s2 }
  0x12   :  { %55 = vrot.lane.b32.xlu0 %v109_v9, %s139_s7  ;;  %61 = vrot.lane.b32.xlu1 %v110_v10, %s140_s8 }
  0x16   :  { %67 = vrot.lane.b32.xlu0 %v111_v11, %s141_s13  ;;  %73 = vrot.lane.b32.xlu1 %v112_v12, %s142_s14 }
  0x1a   :  { %79 = vrot.lane.b32.xlu0 %v113_v13, %s143_s19  ;;  %85 = vrot.lane.b32.xlu1 %v114_v14, %s144_s20 }
  0x1e   :  { %91 = vrot.lane.b32.xlu0 %v115_v15, %s145_s0 }
  0x74   :  { %v8_v16 = vpop.permute.xlu0 %7   ;;  %v20_v17 = vpop.permute.xlu1 %19  }
  0x75   :  { %10 = vst.msk [vmem:[#allocation0] sm:$0x1] %vm9_vm1, %v8_v16  }
  0x78   :  { %v14_v18 = vpop.permute.xlu0 %13   ;;  %v26_v19 = vpop.permute.xlu1 %25  }
  0x79   :  { %16 = vst.msk [vmem:[#allocation0] sm:$0x1] %vm15_vm2, %v14_v18  }
  0x7a   :  { %22 = vst.msk [vmem:[#allocation0] sm:$0x1] %vm21_vm3, %v20_v17  }
  0x7b   :  { %28 = vst.msk [vmem:[#allocation0] sm:$0x1] %vm27_vm4, %v26_v19  }
  0x7c   :  { %v32_v20 = vpop.permute.xlu0 %31   ;;  %v38_v21 = vpop.permute.xlu1 %37  }
  0x7d   :  { %34 = vst.msk [vmem:[#allocation0] sm:$0x1] %vm33_vm5, %v32_v20  }
  0x7e   :  { %40 = vst.msk [vmem:[#allocation0] sm:$0x1] %vm39_vm6, %v38_v21  }
  0x80   :  { %v44_v22 = vpop.permute.xlu0 %43   ;;  %v50_v23 = vpop.permute.xlu1 %49  }
  0x81   :  { %46 = vst.msk [vmem:[#allocation0] sm:$0x1] %vm45_vm7, %v44_v22  }
  0x82   :  { %52 = vst.msk [vmem:[#allocation0] sm:$0x1] %vm51_vm8, %v50_v23  }
  0x84   :  { %v56_v24 = vpop.permute.xlu0 %55   ;;  %v62_v25 = vpop.permute.xlu1 %61  }
  0x85   :  { %58 = vst.msk [vmem:[#allocation0] sm:$0x1] %vm57_vm9, %v56_v24  }
  0x86   :  { %64 = vst.msk [vmem:[#allocation0] sm:$0x1] %vm63_vm10, %v62_v25  }
  0x88   :  { %v68_v26 = vpop.permute.xlu0 %67   ;;  %v74_v27 = vpop.permute.xlu1 %73  }
  0x89   :  { %70 = vst.msk [vmem:[#allocation0] sm:$0x1] %vm69_vm11, %v68_v26  }
  0x8a   :  { %76 = vst.msk [vmem:[#allocation0] sm:$0x1] %vm75_vm12, %v74_v27  }
  0x8c   :  { %v80_v28 = vpop.permute.xlu0 %79   ;;  %v86_v29 = vpop.permute.xlu1 %85  }
  0x8d   :  { %82 = vst.msk [vmem:[#allocation0] sm:$0x1] %vm81_vm13, %v80_v28  }
  0x8e   :  { %88 = vst.msk [vmem:[#allocation0] sm:$0x1] %vm87_vm14, %v86_v29  }
  0x90   :  { %v92_v30 = vpop.permute.xlu0 %91  }
  0x91   :  { %94 = vst.msk [vmem:[#allocation0] sm:$0x1] %vm93_vm15, %v92_v30  }
  0x98   :  { %v98_v31 = vld [vmem:[#allocation0] sm:$0x1] }
  0x99   :  { %100 = vst [vmem:[%s208_s1] sm:$0x1] %v98_v31 }

// kernel: deeper_double_conv.1
= control target key start
LH: loop header
LB: loop body
LE: loop exit
PB: predicated region body
PF: predicated region fallthrough
CT: control target
= control target key end

     0   :  { %v3293_v0 = vmov 0   ;;  %v76_v9 = vlaneseq  ;;  %s4245_s2 = inlined_call_operand.vmem [shape: f32[32,1], index: 2, kind: input, shape index: {}]   ;;  %s4246_s4 = inlined_call_operand.vmem [shape: f32[3,128,128], index: 4, kind: input, shape index: {}]   ;;  %s4247_s3 = inlined_call_operand.vmem [shape: f32[32,1], index: 3, kind: input, shape index: {}]   ;;  %s4248_s0 = inlined_call_operand.vmem [shape: f32[32,128], index: 0, kind: input, shape index: {}]   ;;  %s4249_s1 = inlined_call_operand.vmem [shape: f32[128,128], index: 1, kind: input, shape index: {}]   ;;  %s4250_s7 = inlined_call_operand.vmem [shape: f32[3,128,128], index: 7, kind: input, shape index: {}]   ;;  %s4251_s5 = inlined_call_operand.vmem [shape: f32[1,128], index: 5, kind: input, shape index: {}]   ;;  %s4252_s6 = inlined_call_operand.vmem [shape: f32[1,128], index: 6, kind: input, shape index: {}]   ;;  %s4253_s10 = inlined_call_operand.vmem [shape: f32[3,128,128], index: 10, kind: input, shape index: {}]   ;;  %s4254_s8 = inlined_call_operand.vmem [shape: f32[1,128], index: 8, kind: input, shape index: {}]   ;;  %s4255_s9 = inlined_call_operand.vmem [shape: f32[1,128], index: 9, kind: input, shape index: {}]   ;;  %s4256_s11 = inlined_call_operand.vmem [shape: f32[1,128], index: 11, kind: input, shape index: {}]   ;;  %s4257_s12 = inlined_call_operand.vmem [shape: f32[1,128], index: 12, kind: input, shape index: {}]   ;;  %s4258_s13 = inlined_call_operand.vmem [shape: f32[32,128], index: 13, kind: output, shape index: {}]  }
   0x1   :  { %3285 = vset.pattern.permute.xlu0 %v3293_v0  ;;  %v60_v1 = vld [vmem:[%s4245_s2] sm:$0xff]  ;;  %3286 = vset.pattern.permute.xlu1 %v3293_v0  ;;  %v62_v2 = vld [vmem:[%s4245_s2 + $0x10] sm:$0xff]  ;;  %v61_v3 = vld [vmem:[%s4245_s2 + $0x8] sm:$0xff] }
   0x2   :  { %85 = vperm.xlu0 %3285, %v60_v1   ;;  %95 = vperm.xlu1 %3286, %v62_v2   ;;  %v63_v4 = vld [vmem:[%s4245_s2 + $0x18] sm:$0xff]  ;;  %v1814_v5 = vld [vmem:[%s4246_s4 + $0x80] sm:$0xff]  ;;  %v1815_v6 = vld [vmem:[%s4246_s4 + $0x88] sm:$0xff]  ;;  %v3400_v16 = vshrl.u32 %v76_v9, 7 }
   0x3   :  { %v1816_v7 = vld [vmem:[%s4246_s4 + $0x90] sm:$0xff]  ;;  %v1817_v8 = vld [vmem:[%s4246_s4 + $0x98] sm:$0xff]  ;;  %v2780_v10 = vpack.c.bf16 %v1815_v6, %v1814_v5  ;;  %v1818_v12 = vld [vmem:[%s4246_s4 + $0xa0] sm:$0xff] }
   0x4   :  { %v2784_v11 = vpack.c.bf16 %v1817_v8, %v1816_v7  ;;  %v1819_v13 = vld [vmem:[%s4246_s4 + $0xa8] sm:$0xff]  ;;  %v64_v14 = vld [vmem:[%s4247_s3] sm:$0xff]  ;;  %v1820_v19 = vld [vmem:[%s4246_s4 + $0xb0] sm:$0xff]  ;;  %vm111_vm0 = vcmp.lt.s32.totalorder %v3400_v16, 7  ;;  %vm78_vm1 = vcmp.lt.s32.totalorder %v3400_v16, 1 }
   0x5   :  { %v65_v15 = vld [vmem:[%s4247_s3 + $0x8] sm:$0xff]  ;;  %2781 = vmatprep.subr.bf16.mxu0 %v2780_v10  ;;  %v2788_v17 = vpack.c.bf16 %v1819_v13, %v1818_v12  ;;  %v68_v18 = vld [vmem:[%s4248_s0] sm:$0xff]  ;;  %v1821_v20 = vld [vmem:[%s4246_s4 + $0xb8] sm:$0xff] }
   0x6   :  { %90 = vperm.xlu0 %3285, %v61_v3   ;;  %100 = vperm.xlu1 %3286, %v63_v4   ;;  %v107_v21 = vrot.slane %v68_v18, 1  ;;  %v69_v22 = vld [vmem:[%s4248_s0 + $0x8] sm:$0xff]  ;;  %v66_v23 = vld [vmem:[%s4247_s3 + $0x10] sm:$0xff]  ;;  %v67_v24 = vld [vmem:[%s4247_s3 + $0x18] sm:$0xff]  ;;  %v72_v25 = vrot.slane %v68_v18, 7  ;;  %v2792_v28 = vpack.c.bf16 %v1821_v20, %v1820_v19 }
   0x7   :  { %2783 = vmatpush3.bf16.msra.mxu0 %v2780_v10  ;;  %2242 = vmatprep.mubr.f32.mxu0 %v68_v18  ;;  %v73_v26 = vrot.slane %v69_v22, 7  ;;  %v108_v27 = vrot.slane %v69_v22, 1  ;;  %v1822_v29 = vld [vmem:[%s4246_s4 + $0xc0] sm:$0xff]  ;;  %v1823_v32 = vld [vmem:[%s4246_s4 + $0xc8] sm:$0xff]  ;;  %v70_v33 = vld [vmem:[%s4248_s0 + $0x10] sm:$0xff] }
   0x8   :  { %2785 = vmatprep.subr.bf16.mxu0 %v2784_v11  ;;  %v71_v34 = vld [vmem:[%s4248_s0 + $0x18] sm:$0xff]  ;;  %v74_v35 = vrot.slane %v70_v33, 7  ;;  %v109_v36 = vrot.slane %v70_v33, 1  ;;  %v2796_v39 = vpack.c.bf16 %v1823_v32, %v1822_v29  ;;  %v1824_v43 = vld [vmem:[%s4246_s4 + $0xd0] sm:$0xff]  ;;  %v1826_v47 = vld [vmem:[%s4246_s4 + $0xe0] sm:$0xff] }
   0x9   :  { %v3427_v30 = vsel %vm78_vm1, %v72_v25, %v73_v26  ;;  %v3431_v31 = vsel %vm111_vm0, %v107_v21, %v108_v27  ;;  %v75_v37 = vrot.slane %v71_v34, 7  ;;  %v110_v38 = vrot.slane %v71_v34, 1  ;;  %v1825_v44 = vld [vmem:[%s4246_s4 + $0xd8] sm:$0xff]  ;;  %v1827_v48 = vld [vmem:[%s4246_s4 + $0xe8] sm:$0xff]  ;;  %v1828_v51 = vld [vmem:[%s4246_s4 + $0xf0] sm:$0xff] }
   0xa   :  { %118 = vperm.xlu0 %3285, %v64_v14   ;;  %123 = vperm.xlu1 %3286, %v65_v15   ;;  %v3448_v41 = vsel %vm78_vm1, %v73_v26, %v74_v35  ;;  %v2800_v46 = vpack.c.bf16 %v1825_v44, %v1824_v43  ;;  %v3472_v49 = vsel %vm111_vm0, %v108_v27, %v109_v36  ;;  %v1829_v52 = vld [vmem:[%s4246_s4 + $0xf8] sm:$0xff]  ;;  %v140_v55 = vld [vmem:[%s4246_s4] sm:$0xff]  ;;  %v141_v56 = vld [vmem:[%s4246_s4 + $0x8] sm:$0xff] }
   0xb   :  { %2787 = vmatpush3.bf16.msra.mxu0 %v2784_v11  ;;  %v3444_v40 = vsel %vm78_vm1, %v75_v37, %v72_v25  ;;  %v3452_v42 = vsel %vm78_vm1, %v74_v35, %v75_v37  ;;  %v3462_v45 = vsel %vm111_vm0, %v109_v36, %v110_v38  ;;  %v2804_v50 = vpack.c.bf16 %v1827_v48, %v1826_v47  ;;  %v142_v58 = vld [vmem:[%s4246_s4 + $0x10] sm:$0xff]  ;;  %v143_v59 = vld [vmem:[%s4246_s4 + $0x18] sm:$0xff]  ;;  %v144_v61 = vld [vmem:[%s4246_s4 + $0x20] sm:$0xff] }
   0xc   :  { %2789 = vmatprep.subr.bf16.mxu0 %v2788_v17  ;;  %v3482_v53 = vsel %vm111_vm0, %v110_v38, %v107_v21  ;;  %v2808_v54 = vpack.c.bf16 %v1829_v52, %v1828_v51  ;;  %v2812_v57 = vpack.c.bf16 %v141_v56, %v140_v55  ;;  %v2816_v60 = vpack.c.bf16 %v143_v59, %v142_v58  ;;  %v145_v62 = vld [vmem:[%s4246_s4 + $0x28] sm:$0xff]  ;;  %v146_v0 = vld [vmem:[%s4246_s4 + $0x30] sm:$0xff]  ;;  %v147_v1 = vld [vmem:[%s4246_s4 + $0x38] sm:$0xff] }
   0xd   :  { %v2820_v63 = vpack.c.bf16 %v145_v62, %v144_v61  ;;  %v2824_v2 = vpack.c.bf16 %v147_v1, %v146_v0  ;;  %v44_v3 = vld [vmem:[%s4249_s1] sm:$0xff]  ;;  %v45_v4 = vld [vmem:[%s4249_s1 + $0x8] sm:$0xff]  ;;  %v46_v5 = vld [vmem:[%s4249_s1 + $0x10] sm:$0xff] }
   0xe   :  { %128 = vperm.xlu0 %3285, %v66_v23   ;;  %133 = vperm.xlu1 %3286, %v67_v24   ;;  %v148_v6 = vld [vmem:[%s4246_s4 + $0x40] sm:$0xff]  ;;  %v149_v7 = vld [vmem:[%s4246_s4 + $0x48] sm:$0xff]  ;;  %v3523_v8 = vpack.c.bf16 %v45_v4, %v44_v3  ;;  %v47_v9 = vld [vmem:[%s4249_s1 + $0x18] sm:$0xff] }
   0xf   :  { %2791 = vmatpush3.bf16.msra.mxu0 %v2788_v17  ;;  %v3528_v10 = vpack.c.bf16 %v47_v9, %v46_v5  ;;  %v48_v11 = vld [vmem:[%s4249_s1 + $0x20] sm:$0xff]  ;;  %v49_v12 = vld [vmem:[%s4249_s1 + $0x28] sm:$0xff]  ;;  %v2828_v13 = vpack.c.bf16 %v149_v7, %v148_v6  ;;  %v150_v14 = vld [vmem:[%s4246_s4 + $0x50] sm:$0xff] }
  0x10   :  { %2793 = vmatprep.subr.bf16.mxu0 %v2792_v28  ;;  %2877 = vmatprep.subr.bf16.mxu1 %v3523_v8  ;;  %v151_v15 = vld [vmem:[%s4246_s4 + $0x58] sm:$0xff]  ;;  %v3545_v17 = vpack.c.bf16 %v49_v12, %v48_v11  ;;  %v50_v18 = vld [vmem:[%s4249_s1 + $0x30] sm:$0xff]  ;;  %v152_v21 = vld [vmem:[%s4246_s4 + $0x60] sm:$0xff] }
  0x11   :  { %2879 = vmatpush3.bf16.msra.mxu1 %v3523_v8  ;;  %v51_v19 = vld [vmem:[%s4249_s1 + $0x38] sm:$0xff]  ;;  %v2832_v20 = vpack.c.bf16 %v151_v15, %v150_v14  ;;  %v52_v24 = vld [vmem:[%s4249_s1 + $0x40] sm:$0xff]  ;;  %v53_v25 = vld [vmem:[%s4249_s1 + $0x48] sm:$0xff] }
  0x12   :  { %2881 = vmatprep.subr.bf16.mxu1 %v3528_v10  ;;  %v3561_v23 = vpack.c.bf16 %v51_v19, %v50_v18  ;;  %v154_v27 = vld [vmem:[%s4246_s4 + $0x70] sm:$0xff]  ;;  %v3577_v29 = vpack.c.bf16 %v53_v25, %v52_v24  ;;  %v1830_v35 = vld [vmem:[%s4246_s4 + $0x100] sm:$0xff]  ;;  %v1831_v36 = vld [vmem:[%s4246_s4 + $0x108] sm:$0xff] }
  0x13   :  { %2795 = vmatpush3.bf16.msra.mxu0 %v2792_v28  ;;  %v155_v28 = vld [vmem:[%s4246_s4 + $0x78] sm:$0xff]  ;;  %v54_v32 = vld [vmem:[%s4249_s1 + $0x50] sm:$0xff]  ;;  %v56_v38 = vld [vmem:[%s4249_s1 + $0x60] sm:$0xff]  ;;  %v2844_v43 = vpack.c.bf16 %v1831_v36, %v1830_v35 }
  0x14   :  { %2797 = vmatprep.subr.bf16.mxu0 %v2796_v39  ;;  %v59_v47 = vld [vmem:[%s4249_s1 + $0x78] sm:$0xff]  ;;  %v1835_v61 = vld [vmem:[%s4246_s4 + $0x128] sm:$0xff]  ;;  %v1836_v0 = vld [vmem:[%s4246_s4 + $0x130] sm:$0xff] }
  0x15   :  { %2883 = vmatpush3.bf16.msra.mxu1 %v3528_v10  ;;  %v1833_v55 = vld [vmem:[%s4246_s4 + $0x118] sm:$0xff]  ;;  %v1840_v4 = vld [vmem:[%s4246_s4 + $0x150] sm:$0xff]  ;;  %v1842_v7 = vld [vmem:[%s4246_s4 + $0x160] sm:$0xff] }
  0x16   :  { %2885 = vmatprep.subr.bf16.mxu1 %v3545_v17  ;;  %v1837_v1 = vld [vmem:[%s4246_s4 + $0x138] sm:$0xff]  ;;  %v1843_v9 = vld [vmem:[%s4246_s4 + $0x168] sm:$0xff]  ;;  %v1844_v12 = vld [vmem:[%s4246_s4 + $0x170] sm:$0xff] }
  0x17   :  { %2799 = vmatpush3.bf16.msra.mxu0 %v2796_v39  ;;  %v57_v39 = vld [vmem:[%s4249_s1 + $0x68] sm:$0xff]  ;;  %v1841_v5 = vld [vmem:[%s4246_s4 + $0x158] sm:$0xff]  ;;  %v2868_v11 = vpack.c.bf16 %v1843_v9, %v1842_v7  ;;  %v1848_v35 = vld [vmem:[%s4250_s7 + $0x90] sm:$0xff] }
  0x18   :  { %2801 = vmatprep.subr.bf16.mxu0 %v2800_v46  ;;  %v3603_v44 = vpack.c.bf16 %v57_v39, %v56_v38  ;;  %v2864_v6 = vpack.c.bf16 %v1841_v5, %v1840_v4  ;;  %v1849_v36 = vld [vmem:[%s4250_s7 + $0x98] sm:$0xff]  ;;  %v1850_v39 = vld [vmem:[%s4250_s7 + $0xa0] sm:$0xff] }
  0x19   :  { %2887 = vmatpush3.bf16.msra.mxu1 %v3545_v17  ;;  %v2944_v38 = vpack.c.bf16 %v1849_v36, %v1848_v35 }
  0x1a   :  { %2889 = vmatprep.subr.bf16.mxu1 %v3561_v23 }
  0x1b   :  { %2803 = vmatpush3.bf16.msra.mxu0 %v2800_v46  ;;  %v58_v46 = vld [vmem:[%s4249_s1 + $0x70] sm:$0xff] }
  0x1c   :  { %2805 = vmatprep.subr.bf16.mxu0 %v2804_v50  ;;  %v3613_v48 = vpack.c.bf16 %v59_v47, %v58_v46  ;;  %v1852_v47 = vld [vmem:[%s4250_s7 + $0xb0] sm:$0xff] }
  0x1d   :  { %2891 = vmatpush3.bf16.msra.mxu1 %v3561_v23 }
  0x1e   :  { %2893 = vmatprep.subr.bf16.mxu1 %v3577_v29 }
  0x1f   :  { %2807 = vmatpush3.bf16.msra.mxu0 %v2804_v50 }
  0x20   :  { %2809 = vmatprep.subr.bf16.mxu0 %v2808_v54 }
  0x21   :  { %2895 = vmatpush3.bf16.msra.mxu1 %v3577_v29 }
  0x23   :  { %2811 = vmatpush3.bf16.msra.mxu0 %v2808_v54  ;;  %v1832_v54 = vld [vmem:[%s4246_s4 + $0x110] sm:$0xff] }
  0x24   :  { %2813 = vmatprep.subr.bf16.mxu0 %v2812_v57 }
  0x26   :  { %2243 = vmatmul.mubr.f32.vlgmr.msra.gmra.mrb[0].mxu0 %v69_v22  ;;  %v153_v22 = vld [vmem:[%s4246_s4 + $0x68] sm:$0xff] }
  0x27   :  { %2815 = vmatpush3.bf16.msra.mxu0 %v2812_v57  ;;  %2245 = vmatprep.mubr.f32.mxu0 %v70_v33  ;;  %v2836_v26 = vpack.c.bf16 %v153_v22, %v152_v21  ;;  %v55_v33 = vld [vmem:[%s4249_s1 + $0x58] sm:$0xff] }
  0x28   :  { %2817 = vmatprep.subr.bf16.mxu0 %v2816_v60  ;;  %v3593_v37 = vpack.c.bf16 %v55_v33, %v54_v32  ;;  %v1846_v32 = vld [vmem:[%s4250_s7 + $0x80] sm:$0xff]  ;;  %v1847_v33 = vld [vmem:[%s4250_s7 + $0x88] sm:$0xff] }
  0x2a   :  { %2246 = vmatmul.mubr.f32.gmra.mrb[2].mxu0 %v71_v34  ;;  %v2840_v34 = vpack.c.bf16 %v155_v28, %v154_v27  ;;  %2897 = vmatprep.subr.bf16.mxu1 %v3593_v37 }
  0x2b   :  { %2819 = vmatpush3.bf16.msra.mxu0 %v2816_v60  ;;  %2899 = vmatpush3.bf16.msra.mxu1 %v3593_v37  ;;  %v1834_v60 = vld [vmem:[%s4246_s4 + $0x120] sm:$0xff] }
  0x2c   :  { %2821 = vmatprep.subr.bf16.mxu0 %v2820_v63  ;;  %2901 = vmatprep.subr.bf16.mxu1 %v3603_v44 }
  0x2f   :  { %2823 = vmatpush3.bf16.msra.mxu0 %v2820_v63  ;;  %2903 = vmatpush3.bf16.msra.mxu1 %v3603_v44  ;;  %v2852_v63 = vpack.c.bf16 %v1835_v61, %v1834_v60  ;;  %v1857_v60 = vld [vmem:[%s4250_s7 + $0xd8] sm:$0xff] }
  0x30   :  { %2825 = vmatprep.subr.bf16.mxu0 %v2824_v2  ;;  %2905 = vmatprep.subr.bf16.mxu1 %v3613_v48 }
  0x33   :  { %2827 = vmatpush3.bf16.msra.mxu0 %v2824_v2  ;;  %2907 = vmatpush3.bf16.msra.mxu1 %v3613_v48  ;;  %v1838_v2 = vld [vmem:[%s4246_s4 + $0x140] sm:$0xff] }
  0x34   :  { %2829 = vmatprep.subr.bf16.mxu0 %v2828_v13  ;;  %2909 = vmatprep.subr.bf16.mxu1 %v3523_v8 }
  0x37   :  { %2831 = vmatpush3.bf16.msra.mxu0 %v2828_v13  ;;  %v1845_v13 = vld [vmem:[%s4246_s4 + $0x178] sm:$0xff] }
  0x38   :  { %2833 = vmatprep.subr.bf16.mxu0 %v2832_v20  ;;  %v2872_v14 = vpack.c.bf16 %v1845_v13, %v1844_v12 }
  0x3b   :  { %2835 = vmatpush3.bf16.msra.mxu0 %v2832_v20 }
  0x3c   :  { %2837 = vmatprep.subr.bf16.mxu0 %v2836_v26 }
  0x3f   :  { %2839 = vmatpush3.bf16.msra.mxu0 %v2836_v26 }
  0x40   :  { %2841 = vmatprep.subr.bf16.mxu0 %v2840_v34 }
  0x43   :  { %2843 = vmatpush3.bf16.msra.mxu0 %v2840_v34  ;;  %v2940_v34 = vpack.c.bf16 %v1847_v33, %v1846_v32 }
  0x44   :  { %2845 = vmatprep.subr.bf16.mxu0 %v2844_v43 }
  0x81   :  { %v3619_v50 = vpop.permute.xlu0 %85  ;;  %v3621_v51 = vpop.permute.xlu1 %95 }
  0x82   :  { %v103_v52 = vmul.f32 %v3619_v50, %v3444_v40  ;;  %v105_v56 = vmul.f32 %v3621_v51, %v3448_v41  ;;  %v2848_v40 = vpack.c.bf16 %v1833_v55, %v1832_v54  ;;  %v1854_v54 = vld [vmem:[%s4250_s7 + $0xc0] sm:$0xff] }
  0x84   :  { %2280 = vmatprep.mubr.f32.mxu0 %v103_v52  ;;  %v1853_v52 = vld [vmem:[%s4250_s7 + $0xb8] sm:$0xff] }
  0x85   :  { %v3633_v57 = vpop.permute.xlu0 %90  ;;  %v3635_v58 = vpop.permute.xlu1 %100  ;;  %v2952_v55 = vpack.c.bf16 %v1853_v52, %v1852_v47 }
  0x86   :  { %v104_v59 = vmul.f32 %v3633_v57, %v3427_v30  ;;  %v106_v41 = vmul.f32 %v3635_v58, %v3452_v42  ;;  %v2856_v42 = vpack.c.bf16 %v1837_v1, %v1836_v0  ;;  %v1860_v0 = vld [vmem:[%s4250_s7 + $0xf0] sm:$0xff]  ;;  %v1861_v1 = vld [vmem:[%s4250_s7 + $0xf8] sm:$0xff] }
  0x88   :  { %2281 = vmatmul.mubr.f32.vlgmr.msra.gmra.mrb[0].mxu0 %v104_v59 }
  0x89   :  { %2847 = vmatpush3.bf16.msra.mxu0 %v2844_v43  ;;  %v3647_v62 = vpop.permute.xlu0 %118  ;;  %2283 = vmatprep.mubr.f32.mxu0 %v105_v56  ;;  %v3681_v15 = vpop.permute.xlu1 %123  ;;  %v1851_v43 = vld [vmem:[%s4250_s7 + $0xa8] sm:$0xff] }
  0x8a   :  { %v136_v30 = vmul.f32 %v3647_v62, %v3431_v31  ;;  %2849 = vmatprep.subr.bf16.mxu0 %v2848_v40  ;;  %v1839_v31 = vld [vmem:[%s4246_s4 + $0x148] sm:$0xff]  ;;  %v137_v19 = vmul.f32 %v3681_v15, %v3472_v49  ;;  %v2948_v46 = vpack.c.bf16 %v1851_v43, %v1850_v39 }
  0x8b   :  { %v2860_v3 = vpack.c.bf16 %v1839_v31, %v1838_v2  ;;  %v1855_v56 = vld [vmem:[%s4250_s7 + $0xc8] sm:$0xff]  ;;  %v706_v2 = vld [vmem:[%s4250_s7] sm:$0xff] }
  0x8c   :  { %2284 = vmatmul.mubr.f32.gmra.mrb[2].mxu0 %v106_v41  ;;  %v2956_v59 = vpack.c.bf16 %v1855_v56, %v1854_v54  ;;  %v1858_v41 = vld [vmem:[%s4250_s7 + $0xe0] sm:$0xff]  ;;  %v707_v31 = vld [vmem:[%s4250_s7 + $0x8] sm:$0xff] }
  0x8d   :  { %2851 = vmatpush3.bf16.msra.mxu0 %v2848_v40  ;;  %2318 = vmatprep.mubr.f32.mxu0 %v136_v30  ;;  %v3683_v18 = vpop.permute.xlu0 %128  ;;  %v3690_v21 = vpop.permute.xlu1 %133  ;;  %v1856_v40 = vld [vmem:[%s4250_s7 + $0xd0] sm:$0xff]  ;;  %v1859_v30 = vld [vmem:[%s4250_s7 + $0xe8] sm:$0xff]  ;;  %v643_v56 = vld [vmem:[%s4251_s5] sm:$0x1] }
  0x8e   :  { %2853 = vmatprep.subr.bf16.mxu0 %v2852_v63  ;;  %v138_v20 = vmul.f32 %v3683_v18, %v3462_v45  ;;  %v139_v22 = vmul.f32 %v3690_v21, %v3482_v53  ;;  %v2960_v61 = vpack.c.bf16 %v1857_v60, %v1856_v40 }
  0x91   :  { %2855 = vmatpush3.bf16.msra.mxu0 %v2852_v63  ;;  %v2964_v63 = vpack.c.bf16 %v1859_v30, %v1858_v41 }
  0x92   :  { %2857 = vmatprep.subr.bf16.mxu0 %v2856_v42 }
  0x95   :  { %2859 = vmatpush3.bf16.msra.mxu0 %v2856_v42  ;;  %v2968_v42 = vpack.c.bf16 %v1861_v1, %v1860_v0 }
  0x96   :  { %2861 = vmatprep.subr.bf16.mxu0 %v2860_v3 }
  0x99   :  { %2863 = vmatpush3.bf16.msra.mxu0 %v2860_v3  ;;  %v3799_v3 = vpack.c.bf16 %v707_v31, %v706_v2 }
  0x9a   :  { %2865 = vmatprep.subr.bf16.mxu0 %v2864_v6 }
  0x9d   :  { %2867 = vmatpush3.bf16.msra.mxu0 %v2864_v6 }
  0x9e   :  { %2869 = vmatprep.subr.bf16.mxu0 %v2868_v11 }
  0xa1   :  { %2871 = vmatpush3.bf16.msra.mxu0 %v2868_v11 }
  0xa2   :  { %2873 = vmatprep.subr.bf16.mxu0 %v2872_v14 }
  0xa5   :  { %2875 = vmatpush3.bf16.msra.mxu0 %v2872_v14 }
  0xa6   :  { %3037 = vmatprep.subr.bf16.mxu0 %v3523_v8 }
  0xa8   :  { %2319 = vmatmul.mubr.f32.vlgmr.msra.gmra.mrb[0].mxu0 %v137_v19 }
  0xa9   :  { %2321 = vmatprep.mubr.f32.mxu0 %v138_v20  ;;  %3039 = vmatpush3.bf16.msra.mxu0 %v3523_v8 }
  0xaa   :  { %3041 = vmatprep.subr.bf16.mxu0 %v3528_v10 }
  0xac   :  { %2322 = vmatmul.mubr.f32.gmra.mrb[2].mxu0 %v139_v22 }
  0xad   :  { %3043 = vmatpush3.bf16.msra.mxu0 %v3528_v10 }
  0xae   :  { %3045 = vmatprep.subr.bf16.mxu0 %v3545_v17 }
  0xb1   :  { %3047 = vmatpush3.bf16.msra.mxu0 %v3545_v17 }
  0xb2   :  { %3049 = vmatprep.subr.bf16.mxu0 %v3561_v23 }
  0xb5   :  { %3051 = vmatpush3.bf16.msra.mxu0 %v3561_v23 }
  0xb6   :  { %3053 = vmatprep.subr.bf16.mxu0 %v3577_v29 }
  0xb9   :  { %3055 = vmatpush3.bf16.msra.mxu0 %v3577_v29 }
  0xba   :  { %3057 = vmatprep.subr.bf16.mxu0 %v3593_v37 }
  0xbd   :  { %3059 = vmatpush3.bf16.msra.mxu0 %v3593_v37 }
  0xbe   :  { %3061 = vmatprep.subr.bf16.mxu0 %v3603_v44 }
  0xc1   :  { %3063 = vmatpush3.bf16.msra.mxu0 %v3603_v44 }
  0xc2   :  { %3065 = vmatprep.subr.bf16.mxu0 %v3613_v48 }
  0xc5   :  { %3067 = vmatpush3.bf16.msra.mxu0 %v3613_v48 }
  0xc6   :  { %3069 = vmatprep.subr.bf16.mxu0 %v3523_v8 }
 0x17b   :  { %v3710_v45 = vpop.f32.mrb[0].mxu0 }
 0x17c   :  { %v3712_v49 = vpop.f32.mrb[1].mxu0  ;;  %v544_v26 = vmul.f32 %v3710_v45, %v3710_v45 }
 0x17d   :  { %2356 = vmatprep.mubr.f32.mxu1 %v3712_v49  ;;  %v543_v25 = vmul.f32 %v3712_v49, %v3712_v49 }
 0x17e   :  { %2357 = vmatmul.mubr.f32.vlgmr.msra.gmra.mrb[0].mxu1 %v3710_v45 }
 0x17f   :  { %2911 = vmatpush3.bf16.msra.mxu1 %v3523_v8  ;;  %v3717_v53 = vpop.f32.mrb[2].mxu0 }
 0x180   :  { %v3719_v24 = vpop.f32.mrb[3].mxu0  ;;  %2913 = vmatprep.subr.bf16.mxu1 %v3528_v10  ;;  %v546_v28 = vmul.f32 %v3717_v53, %v3717_v53 }
 0x181   :  { %2359 = vmatprep.mubr.f32.mxu1 %v3719_v24  ;;  %v545_v27 = vmul.f32 %v3719_v24, %v3719_v24 }
 0x182   :  { %2360 = vmatmul.mubr.f32.gmra.mrb[2].mxu1 %v3717_v53 }
 0x183   :  { %2915 = vmatpush3.bf16.msra.mxu1 %v3528_v10  ;;  %2394 = vmatprep.mubr.f32.mxu1 %v543_v25 }
 0x184   :  { %2917 = vmatprep.subr.bf16.mxu1 %v3545_v17 }
 0x187   :  { %2919 = vmatpush3.bf16.msra.mxu1 %v3545_v17 }
 0x188   :  { %2921 = vmatprep.subr.bf16.mxu1 %v3561_v23 }
 0x18b   :  { %2923 = vmatpush3.bf16.msra.mxu1 %v3561_v23 }
 0x18c   :  { %2925 = vmatprep.subr.bf16.mxu1 %v3577_v29 }
 0x18f   :  { %2927 = vmatpush3.bf16.msra.mxu1 %v3577_v29 }
 0x190   :  { %2929 = vmatprep.subr.bf16.mxu1 %v3593_v37 }
 0x193   :  { %2931 = vmatpush3.bf16.msra.mxu1 %v3593_v37 }
 0x194   :  { %2933 = vmatprep.subr.bf16.mxu1 %v3603_v44 }
 0x197   :  { %2935 = vmatpush3.bf16.msra.mxu1 %v3603_v44 }
 0x198   :  { %2937 = vmatprep.subr.bf16.mxu1 %v3613_v48 }
 0x19b   :  { %2939 = vmatpush3.bf16.msra.mxu1 %v3613_v48 }
 0x19c   :  { %2941 = vmatprep.subr.bf16.mxu1 %v2940_v34 }
 0x19e   :  { %2395 = vmatmul.mubr.f32.vlgmr.msra.gmra.mrb[4].mxu1 %v544_v26 }
 0x19f   :  { %2397 = vmatprep.mubr.f32.mxu1 %v545_v27  ;;  %2943 = vmatpush3.bf16.msra.mxu1 %v2940_v34 }
 0x1a0   :  { %2945 = vmatprep.subr.bf16.mxu1 %v2944_v38 }
 0x1a2   :  { %2398 = vmatmul.mubr.f32.gmra.mrb[6].mxu1 %v546_v28 }
 0x1a3   :  { %2947 = vmatpush3.bf16.msra.mxu1 %v2944_v38 }
 0x1a4   :  { %2949 = vmatprep.subr.bf16.mxu1 %v2948_v46 }
 0x1a7   :  { %2951 = vmatpush3.bf16.msra.mxu1 %v2948_v46 }
 0x1a8   :  { %2953 = vmatprep.subr.bf16.mxu1 %v2952_v55 }
 0x1ab   :  { %2955 = vmatpush3.bf16.msra.mxu1 %v2952_v55 }
 0x1ac   :  { %2957 = vmatprep.subr.bf16.mxu1 %v2956_v59 }
 0x1af   :  { %2959 = vmatpush3.bf16.msra.mxu1 %v2956_v59  ;;  %v3806_v59 = vsub.s32 0, %v3400_v16  ;;  %v1282_v16 = vld [vmem:[%s4253_s10 + $0x50] sm:$0xff] }
 0x1b0   :  { %2961 = vmatprep.subr.bf16.mxu1 %v2960_v61 }
 0x1b3   :  { %2963 = vmatpush3.bf16.msra.mxu1 %v2960_v61  ;;  %v647_v61 = vld [vmem:[%s4252_s6] sm:$0x1] }
 0x1b4   :  { %2965 = vmatprep.subr.bf16.mxu1 %v2964_v63 }
 0x1b7   :  { %2967 = vmatpush3.bf16.msra.mxu1 %v2964_v63 }
 0x1b8   :  { %2969 = vmatprep.subr.bf16.mxu1 %v2968_v42 }
 0x1bb   :  { %2971 = vmatpush3.bf16.msra.mxu1 %v2968_v42 }
 0x1bc   :  { %2973 = vmatprep.subr.bf16.mxu1 %v3799_v3 }
 0x251   :  { %v2358_v4 = vpop.f32.mrb[0].mxu1 }
 0x252   :  { %v515_v5 = vpop.f32.mrb[1].mxu1 }
 0x253   :  { %v534_v6 = vadd.f32 %v2358_v4, %v515_v5 }
 0x255   :  { %v2361_v7 = vpop.f32.mrb[2].mxu1 }
 0x256   :  { %v525_v9 = vpop.f32.mrb[3].mxu1 }
 0x257   :  { %v535_v11 = vadd.f32 %v534_v6, %v525_v9  ;;  %v709_v9 = vld [vmem:[%s4250_s7 + $0x18] sm:$0xff] }
 0x259   :  { %v536_v12 = vadd.f32 %v2361_v7, %v535_v11  ;;  %v708_v7 = vld [vmem:[%s4250_s7 + $0x10] sm:$0xff] }
 0x25b   :  { %v537_v13 = vrot.slane %v536_v12, 4 }
 0x25d   :  { %v538_v14 = vadd.f32 %v537_v13, %v536_v12  ;;  %v2976_v13 = vpack.c.bf16 %v709_v9, %v708_v7  ;;  %v1864_v7 = vld [vmem:[%s4250_s7 + $0x110] sm:$0xff]  ;;  %v1865_v9 = vld [vmem:[%s4250_s7 + $0x118] sm:$0xff] }
 0x25f   :  { %v539_v25 = vrot.slane %v538_v14, 2 }
 0x261   :  { %v540_v32 = vadd.f32 %v539_v25, %v538_v14  ;;  %v711_v25 = vld [vmem:[%s4250_s7 + $0x28] sm:$0xff] }
 0x263   :  { %v541_v35 = vrot.slane %v540_v32, 1 }
 0x265   :  { %v542_v39 = vadd.f32 %v541_v35, %v540_v32 }
 0x267   :  { %v641_v47 = vmul.f32 %v542_v39, %v542_v39 }
 0x271   :  { %v2396_v19 = vpop.f32.mrb[4].mxu1 }
 0x272   :  { %v613_v20 = vpop.f32.mrb[5].mxu1 }
 0x273   :  { %v632_v22 = vadd.f32 %v2396_v19, %v613_v20 }
 0x275   :  { %v2399_v26 = vpop.f32.mrb[6].mxu1 }
 0x276   :  { %v623_v27 = vpop.f32.mrb[7].mxu1 }
 0x277   :  { %v633_v28 = vadd.f32 %v632_v22, %v623_v27  ;;  %v710_v22 = vld [vmem:[%s4250_s7 + $0x20] sm:$0xff] }
 0x279   :  { %v634_v33 = vadd.f32 %v2399_v26, %v633_v28 }
 0x27b   :  { %v635_v34 = vrot.slane %v634_v33, 4 }
 0x27d   :  { %v636_v36 = vadd.f32 %v635_v34, %v634_v33 }
 0x27f   :  { %v637_v38 = vrot.slane %v636_v36, 2 }
 0x281   :  { %v638_v43 = vadd.f32 %v637_v38, %v636_v36  ;;  %v2980_v36 = vpack.c.bf16 %v711_v25, %v710_v22  ;;  %v1870_v25 = vld [vmem:[%s4250_s7 + $0x140] sm:$0xff] }
 0x283   :  { %v639_v46 = vrot.slane %v638_v43, 1 }
 0x285   :  { %v640_v52 = vadd.f32 %v639_v46, %v638_v43  ;;  %v713_v43 = vld [vmem:[%s4250_s7 + $0x38] sm:$0xff] }
 0x287   :  { %v642_v54 = vsub.f32 %v640_v52, %v641_v47 }
 0x289   :  { %v644_v55 = vadd.f32 1e-05, %v642_v54 }
 0x28b   :  { %3287 = vrsqrt.f32 %v644_v55 }
 0x295   :  { %v3288_v40 = vpop.eup %3287 }
 0x296   :  { %v646_v60 = vmul.f32 %v3288_v40, %v643_v56  ;;  %v714_v56 = vld [vmem:[%s4250_s7 + $0x40] sm:$0xff]  ;;  %v715_v40 = vld [vmem:[%s4250_s7 + $0x48] sm:$0xff] }
 0x298   :  { %v648_v41 = vmul.f32 %v646_v60, %v542_v39  ;;  %v654_v30 = vrot.slane %v646_v60, %v3806_v59  ;;  %v2988_v60 = vpack.c.bf16 %v715_v40, %v714_v56 }
 0x29a   :  { %v649_v63 = vsub.f32 %v647_v61, %v648_v41  ;;  %v656_v0 = vmul.f32 %v654_v30, %v3712_v49  ;;  %v657_v1 = vmul.f32 %v3710_v45, %v654_v30  ;;  %v658_v42 = vmul.f32 %v654_v30, %v3719_v24  ;;  %v716_v61 = vld [vmem:[%s4250_s7 + $0x50] sm:$0xff]  ;;  %v717_v41 = vld [vmem:[%s4250_s7 + $0x58] sm:$0xff] }
 0x29b   :  { %v659_v2 = vmul.f32 %v3717_v53, %v654_v30  ;;  %v2992_v30 = vpack.c.bf16 %v717_v41, %v716_v61 }
 0x29c   :  { %v664_v31 = vrot.slane %v649_v63, %v3806_v59  ;;  %v718_v63 = vld [vmem:[%s4250_s7 + $0x60] sm:$0xff] }
 0x29e   :  { %v666_v4 = vadd.f32 %v664_v31, %v656_v0  ;;  %v667_v5 = vadd.f32 %v664_v31, %v657_v1  ;;  %v668_v6 = vadd.f32 %v664_v31, %v658_v42  ;;  %v669_v49 = vadd.f32 %v664_v31, %v659_v2  ;;  %v719_v0 = vld [vmem:[%s4250_s7 + $0x68] sm:$0xff]  ;;  %v720_v42 = vld [vmem:[%s4250_s7 + $0x70] sm:$0xff]  ;;  %v721_v2 = vld [vmem:[%s4250_s7 + $0x78] sm:$0xff] }
 0x29f   :  { %v2996_v1 = vpack.c.bf16 %v719_v0, %v718_v63  ;;  %v3000_v31 = vpack.c.bf16 %v721_v2, %v720_v42  ;;  %v1879_v63 = vld [vmem:[%s4253_s10 + $0x88] sm:$0xff]  ;;  %v1881_v42 = vld [vmem:[%s4253_s10 + $0x98] sm:$0xff] }
 0x2a0   :  { %v670_v11 = vmax.f32 %v666_v4, 0.0  ;;  %v671_v45 = vmax.f32 %v667_v5, 0.0  ;;  %v672_v12 = vmax.f32 %v668_v6, 0.0  ;;  %v673_v24 = vmax.f32 %v669_v49, 0.0  ;;  %v1862_v4 = vld [vmem:[%s4250_s7 + $0x100] sm:$0xff]  ;;  %v1863_v5 = vld [vmem:[%s4250_s7 + $0x108] sm:$0xff] }
 0x2a1   :  { %v3004_v6 = vpack.c.bf16 %v1863_v5, %v1862_v4  ;;  %v1883_v4 = vld [vmem:[%s4253_s10 + $0xa8] sm:$0xff] }
 0x2a2   :  { %v682_v53 = vrot.slane %v670_v11, 7  ;;  %v694_v14 = vrot.slane %v670_v11, 1  ;;  %2432 = vmatprep.mubr.f32.mxu1 %v670_v11  ;;  %v683_v19 = vrot.slane %v671_v45, 7  ;;  %v684_v20 = vrot.slane %v672_v12, 7 }
 0x2a3   :  { %2433 = vmatmul.mubr.f32.vlgmr.msra.gmra.mrb[8].mxu1 %v671_v45  ;;  %v696_v26 = vrot.slane %v672_v12, 1  ;;  %v685_v27 = vrot.slane %v673_v24, 7  ;;  %v697_v28 = vrot.slane %v673_v24, 1  ;;  %v695_v32 = vrot.slane %v671_v45, 1 }
 0x2a4   :  { %2975 = vmatpush3.bf16.msra.mxu1 %v3799_v3  ;;  %2435 = vmatprep.mubr.f32.mxu1 %v672_v12  ;;  %v688_v33 = vsel %vm78_vm1, %v682_v53, %v683_v19  ;;  %v687_v34 = vsel %vm78_vm1, %v683_v19, %v684_v20  ;;  %v712_v3 = vld [vmem:[%s4250_s7 + $0x30] sm:$0xff]  ;;  %v3008_v11 = vpack.c.bf16 %v1865_v9, %v1864_v7  ;;  %v1866_v12 = vld [vmem:[%s4250_s7 + $0x120] sm:$0xff]  ;;  %v1885_v7 = vld [vmem:[%s4253_s10 + $0xb8] sm:$0xff] }
 0x2a5   :  { %2977 = vmatprep.subr.bf16.mxu1 %v2976_v13  ;;  %v689_v35 = vsel %vm78_vm1, %v685_v27, %v682_v53  ;;  %v686_v38 = vsel %vm78_vm1, %v684_v20, %v685_v27  ;;  %v700_v46 = vsel %vm111_vm0, %v694_v14, %v695_v32  ;;  %v3849_v47 = vsel %vm111_vm0, %v695_v32, %v696_v26  ;;  %v1868_v19 = vld [vmem:[%s4250_s7 + $0x130] sm:$0xff]  ;;  %v1869_v20 = vld [vmem:[%s4250_s7 + $0x138] sm:$0xff]  ;;  %v1886_v9 = vld [vmem:[%s4253_s10 + $0xc0] sm:$0xff] }
 0x2a6   :  { %v690_v39 = vmul.f32 %v689_v35, %v3619_v50  ;;  %v3853_v52 = vsel %vm111_vm0, %v696_v26, %v697_v28  ;;  %v3857_v54 = vsel %vm111_vm0, %v697_v28, %v694_v14  ;;  %v2984_v55 = vpack.c.bf16 %v713_v43, %v712_v3  ;;  %v1871_v26 = vld [vmem:[%s4250_s7 + $0x148] sm:$0xff]  ;;  %v1872_v28 = vld [vmem:[%s4250_s7 + $0x150] sm:$0xff]  ;;  %v1873_v32 = vld [vmem:[%s4250_s7 + $0x158] sm:$0xff] }
 0x2a7   :  { %2436 = vmatmul.mubr.f32.gmra.mrb[10].mxu1 %v673_v24  ;;  %v691_v49 = vmul.f32 %v688_v33, %v3633_v57  ;;  %v692_v45 = vmul.f32 %v687_v34, %v3621_v51  ;;  %v1867_v24 = vld [vmem:[%s4250_s7 + $0x128] sm:$0xff]  ;;  %v702_v14 = vmul.f32 %v700_v46, %v3647_v62  ;;  %v3016_v22 = vpack.c.bf16 %v1869_v20, %v1868_v19  ;;  %v1874_v34 = vld [vmem:[%s4250_s7 + $0x160] sm:$0xff]  ;;  %v1892_v20 = vld [vmem:[%s4253_s10 + $0xf0] sm:$0xff] }
 0x2a8   :  { %2979 = vmatpush3.bf16.msra.mxu1 %v2976_v13  ;;  %2470 = vmatprep.mubr.f32.mxu1 %v690_v39  ;;  %v693_v13 = vmul.f32 %v686_v38, %v3635_v58  ;;  %v3012_v53 = vpack.c.bf16 %v1867_v24, %v1866_v12  ;;  %v3020_v27 = vpack.c.bf16 %v1871_v26, %v1870_v25  ;;  %v1875_v35 = vld [vmem:[%s4250_s7 + $0x168] sm:$0xff]  ;;  %v1876_v38 = vld [vmem:[%s4250_s7 + $0x170] sm:$0xff]  ;;  %v1877_v39 = vld [vmem:[%s4250_s7 + $0x178] sm:$0xff] }
 0x2a9   :  { %2981 = vmatprep.subr.bf16.mxu1 %v2980_v36  ;;  %v3024_v33 = vpack.c.bf16 %v1873_v32, %v1872_v28  ;;  %v3032_v3 = vpack.c.bf16 %v1877_v39, %v1876_v38  ;;  %v703_v43 = vmul.f32 %v3849_v47, %v3681_v15  ;;  %v704_v46 = vmul.f32 %v3853_v52, %v3683_v18  ;;  %v1888_v12 = vld [vmem:[%s4253_s10 + $0xd0] sm:$0xff]  ;;  %v1889_v24 = vld [vmem:[%s4253_s10 + $0xd8] sm:$0xff]  ;;  %v1272_v26 = vld [vmem:[%s4253_s10] sm:$0xff] }
 0x2ac   :  { %2983 = vmatpush3.bf16.msra.mxu1 %v2980_v36  ;;  %v3028_v36 = vpack.c.bf16 %v1875_v35, %v1874_v34 }
 0x2ad   :  { %2985 = vmatprep.subr.bf16.mxu1 %v2984_v55 }
 0x2b0   :  { %2987 = vmatpush3.bf16.msra.mxu1 %v2984_v55  ;;  %v705_v55 = vmul.f32 %v3857_v54, %v3690_v21 }
 0x2b1   :  { %2989 = vmatprep.subr.bf16.mxu1 %v2988_v60 }
 0x2b4   :  { %2991 = vmatpush3.bf16.msra.mxu1 %v2988_v60 }
 0x2b5   :  { %2993 = vmatprep.subr.bf16.mxu1 %v2992_v30 }
 0x2b8   :  { %2995 = vmatpush3.bf16.msra.mxu1 %v2992_v30  ;;  %v1878_v30 = vld [vmem:[%s4253_s10 + $0x80] sm:$0xff] }
 0x2b9   :  { %2997 = vmatprep.subr.bf16.mxu1 %v2996_v1  ;;  %v3100_v0 = vpack.c.bf16 %v1879_v63, %v1878_v30 }
 0x2bc   :  { %2999 = vmatpush3.bf16.msra.mxu1 %v2996_v1  ;;  %v1880_v1 = vld [vmem:[%s4253_s10 + $0x90] sm:$0xff] }
 0x2bd   :  { %3001 = vmatprep.subr.bf16.mxu1 %v3000_v31  ;;  %v3104_v2 = vpack.c.bf16 %v1881_v42, %v1880_v1 }
 0x2c0   :  { %3003 = vmatpush3.bf16.msra.mxu1 %v3000_v31  ;;  %v1882_v31 = vld [vmem:[%s4253_s10 + $0xa0] sm:$0xff] }
 0x2c1   :  { %3005 = vmatprep.subr.bf16.mxu1 %v3004_v6  ;;  %v3108_v5 = vpack.c.bf16 %v1883_v4, %v1882_v31 }
 0x2c3   :  { %2471 = vmatmul.mubr.f32.vlgmr.msra.gmra.mrb[8].mxu1 %v691_v49 }
 0x2c4   :  { %2473 = vmatprep.mubr.f32.mxu1 %v692_v45  ;;  %3007 = vmatpush3.bf16.msra.mxu1 %v3004_v6  ;;  %v1884_v6 = vld [vmem:[%s4253_s10 + $0xb0] sm:$0xff] }
 0x2c5   :  { %3009 = vmatprep.subr.bf16.mxu1 %v3008_v11  ;;  %v3112_v49 = vpack.c.bf16 %v1885_v7, %v1884_v6 }
 0x2c7   :  { %2474 = vmatmul.mubr.f32.gmra.mrb[10].mxu1 %v693_v13  ;;  %v3120_v13 = vpack.c.bf16 %v1889_v24, %v1888_v12 }
 0x2c8   :  { %3011 = vmatpush3.bf16.msra.mxu1 %v3008_v11  ;;  %2508 = vmatprep.mubr.f32.mxu1 %v702_v14  ;;  %v1887_v11 = vld [vmem:[%s4253_s10 + $0xc8] sm:$0xff] }
 0x2c9   :  { %3013 = vmatprep.subr.bf16.mxu1 %v3012_v53  ;;  %v3116_v45 = vpack.c.bf16 %v1887_v11, %v1886_v9  ;;  %v1891_v14 = vld [vmem:[%s4253_s10 + $0xe8] sm:$0xff] }
 0x2cc   :  { %3015 = vmatpush3.bf16.msra.mxu1 %v3012_v53  ;;  %v1890_v53 = vld [vmem:[%s4253_s10 + $0xe0] sm:$0xff] }
 0x2cd   :  { %3017 = vmatprep.subr.bf16.mxu1 %v3016_v22  ;;  %v3124_v19 = vpack.c.bf16 %v1891_v14, %v1890_v53 }
 0x2d0   :  { %3019 = vmatpush3.bf16.msra.mxu1 %v3016_v22  ;;  %v1893_v22 = vld [vmem:[%s4253_s10 + $0xf8] sm:$0xff] }
 0x2d1   :  { %3021 = vmatprep.subr.bf16.mxu1 %v3020_v27  ;;  %v3128_v25 = vpack.c.bf16 %v1893_v22, %v1892_v20 }
 0x2d4   :  { %3023 = vmatpush3.bf16.msra.mxu1 %v3020_v27  ;;  %v1273_v27 = vld [vmem:[%s4253_s10 + $0x8] sm:$0xff] }
 0x2d5   :  { %3025 = vmatprep.subr.bf16.mxu1 %v3024_v33  ;;  %v4047_v28 = vpack.c.bf16 %v1273_v27, %v1272_v26 }
 0x2d8   :  { %3027 = vmatpush3.bf16.msra.mxu1 %v3024_v33 }
 0x2d9   :  { %3029 = vmatprep.subr.bf16.mxu1 %v3028_v36 }
 0x2dc   :  { %3031 = vmatpush3.bf16.msra.mxu1 %v3028_v36 }
 0x2dd   :  { %3033 = vmatprep.subr.bf16.mxu1 %v3032_v3 }
 0x2e0   :  { %3035 = vmatpush3.bf16.msra.mxu1 %v3032_v3 }
 0x2e1   :  { %3197 = vmatprep.subr.bf16.mxu1 %v3523_v8 }
 0x2e3   :  { %2509 = vmatmul.mubr.f32.vlgmr.msra.gmra.mrb[8].mxu1 %v703_v43 }
 0x2e4   :  { %2511 = vmatprep.mubr.f32.mxu1 %v704_v46  ;;  %3199 = vmatpush3.bf16.msra.mxu1 %v3523_v8 }
 0x2e5   :  { %3201 = vmatprep.subr.bf16.mxu1 %v3528_v10 }
 0x2e7   :  { %2512 = vmatmul.mubr.f32.gmra.mrb[10].mxu1 %v705_v55 }
 0x2e8   :  { %3203 = vmatpush3.bf16.msra.mxu1 %v3528_v10 }
 0x2e9   :  { %3205 = vmatprep.subr.bf16.mxu1 %v3545_v17 }
 0x2ec   :  { %3207 = vmatpush3.bf16.msra.mxu1 %v3545_v17 }
 0x2ed   :  { %3209 = vmatprep.subr.bf16.mxu1 %v3561_v23 }
 0x2f0   :  { %3211 = vmatpush3.bf16.msra.mxu1 %v3561_v23 }
 0x2f1   :  { %3213 = vmatprep.subr.bf16.mxu1 %v3577_v29 }
 0x2f4   :  { %3215 = vmatpush3.bf16.msra.mxu1 %v3577_v29 }
 0x2f5   :  { %3217 = vmatprep.subr.bf16.mxu1 %v3593_v37 }
 0x2f8   :  { %3219 = vmatpush3.bf16.msra.mxu1 %v3593_v37 }
 0x2f9   :  { %3221 = vmatprep.subr.bf16.mxu1 %v3603_v44 }
 0x2fc   :  { %3223 = vmatpush3.bf16.msra.mxu1 %v3603_v44 }
 0x2fd   :  { %3225 = vmatprep.subr.bf16.mxu1 %v3613_v48 }
 0x300   :  { %3227 = vmatpush3.bf16.msra.mxu1 %v3613_v48 }
 0x301   :  { %3229 = vmatprep.subr.bf16.mxu1 %v3523_v8 }
 0x3b6   :  { %v3958_v47 = vpop.f32.mrb[8].mxu1 }
 0x3b7   :  { %v3960_v52 = vpop.f32.mrb[9].mxu1  ;;  %v1110_v60 = vmul.f32 %v3958_v47, %v3958_v47 }
 0x3b8   :  { %2546 = vmatprep.mubr.f32.mxu0 %v3960_v52  ;;  %v1109_v40 = vmul.f32 %v3960_v52, %v3960_v52 }
 0x3b9   :  { %2547 = vmatmul.mubr.f32.vlgmr.msra.gmra.mrb[4].mxu0 %v3958_v47 }
 0x3ba   :  { %3071 = vmatpush3.bf16.msra.mxu0 %v3523_v8  ;;  %v3965_v54 = vpop.f32.mrb[10].mxu1 }
 0x3bb   :  { %v3967_v56 = vpop.f32.mrb[11].mxu1  ;;  %3073 = vmatprep.subr.bf16.mxu0 %v3528_v10  ;;  %v1112_v41 = vmul.f32 %v3965_v54, %v3965_v54 }
 0x3bc   :  { %2549 = vmatprep.mubr.f32.mxu0 %v3967_v56  ;;  %v1111_v61 = vmul.f32 %v3967_v56, %v3967_v56 }
 0x3bd   :  { %2550 = vmatmul.mubr.f32.gmra.mrb[6].mxu0 %v3965_v54 }
 0x3be   :  { %3075 = vmatpush3.bf16.msra.mxu0 %v3528_v10  ;;  %2584 = vmatprep.mubr.f32.mxu0 %v1109_v40 }
 0x3bf   :  { %3077 = vmatprep.subr.bf16.mxu0 %v3545_v17 }
 0x3c2   :  { %3079 = vmatpush3.bf16.msra.mxu0 %v3545_v17 }
 0x3c3   :  { %3081 = vmatprep.subr.bf16.mxu0 %v3561_v23 }
 0x3c6   :  { %3083 = vmatpush3.bf16.msra.mxu0 %v3561_v23 }
 0x3c7   :  { %3085 = vmatprep.subr.bf16.mxu0 %v3577_v29 }
 0x3ca   :  { %3087 = vmatpush3.bf16.msra.mxu0 %v3577_v29 }
 0x3cb   :  { %3089 = vmatprep.subr.bf16.mxu0 %v3593_v37 }
 0x3ce   :  { %3091 = vmatpush3.bf16.msra.mxu0 %v3593_v37 }
 0x3cf   :  { %3093 = vmatprep.subr.bf16.mxu0 %v3603_v44 }
 0x3d2   :  { %3095 = vmatpush3.bf16.msra.mxu0 %v3603_v44 }
 0x3d3   :  { %3097 = vmatprep.subr.bf16.mxu0 %v3613_v48 }
 0x3d6   :  { %3099 = vmatpush3.bf16.msra.mxu0 %v3613_v48 }
 0x3d7   :  { %3101 = vmatprep.subr.bf16.mxu0 %v3100_v0 }
 0x3d9   :  { %2585 = vmatmul.mubr.f32.vlgmr.msra.gmra.mrb[8].mxu0 %v1110_v60 }
 0x3da   :  { %2587 = vmatprep.mubr.f32.mxu0 %v1111_v61  ;;  %3103 = vmatpush3.bf16.msra.mxu0 %v3100_v0 }
 0x3db   :  { %3105 = vmatprep.subr.bf16.mxu0 %v3104_v2 }
 0x3dd   :  { %2588 = vmatmul.mubr.f32.gmra.mrb[10].mxu0 %v1112_v41 }
 0x3de   :  { %3107 = vmatpush3.bf16.msra.mxu0 %v3104_v2 }
 0x3df   :  { %3109 = vmatprep.subr.bf16.mxu0 %v3108_v5 }
 0x3e2   :  { %3111 = vmatpush3.bf16.msra.mxu0 %v3108_v5 }
 0x3e3   :  { %3113 = vmatprep.subr.bf16.mxu0 %v3112_v49 }
 0x3e6   :  { %3115 = vmatpush3.bf16.msra.mxu0 %v3112_v49 }
 0x3e7   :  { %3117 = vmatprep.subr.bf16.mxu0 %v3116_v45 }
 0x3ea   :  { %3119 = vmatpush3.bf16.msra.mxu0 %v3116_v45  ;;  %v1209_v45 = vld [vmem:[%s4254_s8] sm:$0x1] }
 0x3eb   :  { %3121 = vmatprep.subr.bf16.mxu0 %v3120_v13 }
 0x3ee   :  { %3123 = vmatpush3.bf16.msra.mxu0 %v3120_v13  ;;  %v1213_v13 = vld [vmem:[%s4255_s9] sm:$0x1] }
 0x3ef   :  { %3125 = vmatprep.subr.bf16.mxu0 %v3124_v19 }
 0x3f2   :  { %3127 = vmatpush3.bf16.msra.mxu0 %v3124_v19 }
 0x3f3   :  { %3129 = vmatprep.subr.bf16.mxu0 %v3128_v25 }
 0x3f6   :  { %3131 = vmatpush3.bf16.msra.mxu0 %v3128_v25 }
 0x3f7   :  { %3133 = vmatprep.subr.bf16.mxu0 %v4047_v28 }
 0x48c   :  { %v2548_v32 = vpop.f32.mrb[4].mxu0 }
 0x48d   :  { %v1081_v33 = vpop.f32.mrb[5].mxu0 }
 0x48e   :  { %v1100_v34 = vadd.f32 %v2548_v32, %v1081_v33 }
 0x490   :  { %v2551_v35 = vpop.f32.mrb[6].mxu0 }
 0x491   :  { %v1091_v36 = vpop.f32.mrb[7].mxu0 }
 0x492   :  { %v1101_v38 = vadd.f32 %v1100_v34, %v1091_v36  ;;  %v1275_v36 = vld [vmem:[%s4253_s10 + $0x18] sm:$0xff] }
 0x494   :  { %v1102_v39 = vadd.f32 %v2551_v35, %v1101_v38  ;;  %v1274_v35 = vld [vmem:[%s4253_s10 + $0x10] sm:$0xff] }
 0x496   :  { %v1103_v3 = vrot.slane %v1102_v39, 4 }
 0x498   :  { %v1104_v43 = vadd.f32 %v1103_v3, %v1102_v39  ;;  %v3136_v3 = vpack.c.bf16 %v1275_v36, %v1274_v35 }
 0x49a   :  { %v1105_v60 = vrot.slane %v1104_v43, 2 }
 0x49c   :  { %v1106_v63 = vadd.f32 %v1105_v60, %v1104_v43  ;;  %v1277_v60 = vld [vmem:[%s4253_s10 + $0x28] sm:$0xff] }
 0x49e   :  { %v1107_v42 = vrot.slane %v1106_v63, 1 }
 0x4a0   :  { %v1108_v4 = vadd.f32 %v1107_v42, %v1106_v63 }
 0x4a2   :  { %v1207_v7 = vmul.f32 %v1108_v4, %v1108_v4 }
 0x4ac   :  { %v2586_v46 = vpop.f32.mrb[8].mxu0 }
 0x4ad   :  { %v1179_v55 = vpop.f32.mrb[9].mxu0 }
 0x4ae   :  { %v1198_v40 = vadd.f32 %v2586_v46, %v1179_v55 }
 0x4b0   :  { %v2589_v61 = vpop.f32.mrb[10].mxu0 }
 0x4b1   :  { %v1189_v41 = vpop.f32.mrb[11].mxu0 }
 0x4b2   :  { %v1199_v30 = vadd.f32 %v1198_v40, %v1189_v41  ;;  %v1276_v40 = vld [vmem:[%s4253_s10 + $0x20] sm:$0xff] }
 0x4b4   :  { %v1200_v0 = vadd.f32 %v2589_v61, %v1199_v30 }
 0x4b6   :  { %v1201_v1 = vrot.slane %v1200_v0, 4 }
 0x4b8   :  { %v1202_v2 = vadd.f32 %v1201_v1, %v1200_v0 }
 0x4ba   :  { %v1203_v31 = vrot.slane %v1202_v2, 2 }
 0x4bc   :  { %v1204_v5 = vadd.f32 %v1203_v31, %v1202_v2  ;;  %v3140_v2 = vpack.c.bf16 %v1277_v60, %v1276_v40  ;;  %v1906_v60 = vld [vmem:[%s4253_s10 + $0x160] sm:$0xff] }
 0x4be   :  { %v1205_v6 = vrot.slane %v1204_v5, 1 }
 0x4c0   :  { %v1206_v9 = vadd.f32 %v1205_v6, %v1204_v5  ;;  %v1279_v5 = vld [vmem:[%s4253_s10 + $0x38] sm:$0xff] }
 0x4c2   :  { %v1208_v49 = vsub.f32 %v1206_v9, %v1207_v7 }
 0x4c4   :  { %v1210_v11 = vadd.f32 1e-05, %v1208_v49 }
 0x4c6   :  { %3289 = vrsqrt.f32 %v1210_v11  ;;  %v1280_v11 = vld [vmem:[%s4253_s10 + $0x40] sm:$0xff] }
 0x4d0   :  { %v3290_v12 = vpop.eup %3289 }
 0x4d1   :  { %v1212_v24 = vmul.f32 %v3290_v12, %v1209_v45  ;;  %v1281_v45 = vld [vmem:[%s4253_s10 + $0x48] sm:$0xff] }
 0x4d2   :  { %v3148_v12 = vpack.c.bf16 %v1281_v45, %v1280_v11 }
 0x4d3   :  { %v1214_v53 = vmul.f32 %v1212_v24, %v1108_v4  ;;  %v1220_v14 = vrot.slane %v1212_v24, %v3806_v59  ;;  %v1283_v24 = vld [vmem:[%s4253_s10 + $0x58] sm:$0xff] }
 0x4d5   :  { %v1215_v19 = vsub.f32 %v1213_v13, %v1214_v53  ;;  %v1222_v20 = vmul.f32 %v1220_v14, %v3960_v52  ;;  %v1223_v22 = vmul.f32 %v3958_v47, %v1220_v14  ;;  %v1224_v25 = vmul.f32 %v1220_v14, %v3967_v56  ;;  %v1284_v53 = vld [vmem:[%s4253_s10 + $0x60] sm:$0xff] }
 0x4d6   :  { %v1225_v26 = vmul.f32 %v3965_v54, %v1220_v14  ;;  %v3152_v13 = vpack.c.bf16 %v1283_v24, %v1282_v16  ;;  %v1285_v14 = vld [vmem:[%s4253_s10 + $0x68] sm:$0xff] }
 0x4d7   :  { %v1230_v27 = vrot.slane %v1215_v19, %v3806_v59  ;;  %v3156_v19 = vpack.c.bf16 %v1285_v14, %v1284_v53 }
 0x4d9   :  { %v1232_v32 = vadd.f32 %v1230_v27, %v1222_v20  ;;  %v1233_v33 = vadd.f32 %v1230_v27, %v1223_v22  ;;  %v1234_v34 = vadd.f32 %v1230_v27, %v1224_v25  ;;  %v1235_v52 = vadd.f32 %v1230_v27, %v1225_v26  ;;  %v1286_v20 = vld [vmem:[%s4253_s10 + $0x70] sm:$0xff]  ;;  %v1287_v22 = vld [vmem:[%s4253_s10 + $0x78] sm:$0xff]  ;;  %v1894_v26 = vld [vmem:[%s4253_s10 + $0x100] sm:$0xff] }
 0x4da   :  { %v3160_v25 = vpack.c.bf16 %v1287_v22, %v1286_v20  ;;  %v1895_v27 = vld [vmem:[%s4253_s10 + $0x108] sm:$0xff] }
 0x4db   :  { %v1236_v38 = vmax.f32 %v1232_v32, 0.0  ;;  %v1237_v47 = vmax.f32 %v1233_v33, 0.0  ;;  %v1238_v39 = vmax.f32 %v1234_v34, 0.0  ;;  %v1239_v56 = vmax.f32 %v1235_v52, 0.0  ;;  %v1896_v33 = vld [vmem:[%s4253_s10 + $0x110] sm:$0xff]  ;;  %v1897_v34 = vld [vmem:[%s4253_s10 + $0x118] sm:$0xff] }
 0x4dc   :  { %v3164_v32 = vpack.c.bf16 %v1895_v27, %v1894_v26  ;;  %v3168_v36 = vpack.c.bf16 %v1897_v34, %v1896_v33 }
 0x4dd   :  { %v1248_v54 = vrot.slane %v1236_v38, 7  ;;  %v1260_v43 = vrot.slane %v1236_v38, 1  ;;  %2622 = vmatprep.mubr.f32.mxu0 %v1236_v38  ;;  %v1249_v46 = vrot.slane %v1237_v47, 7  ;;  %v1250_v55 = vrot.slane %v1238_v39, 7  ;;  %v1898_v38 = vld [vmem:[%s4253_s10 + $0x120] sm:$0xff] }
 0x4de   :  { %2623 = vmatmul.mubr.f32.vlgmr.msra.gmra.mrb[12].mxu0 %v1237_v47  ;;  %v1262_v61 = vrot.slane %v1238_v39, 1  ;;  %v1251_v41 = vrot.slane %v1239_v56, 7  ;;  %v1263_v30 = vrot.slane %v1239_v56, 1  ;;  %v1261_v63 = vrot.slane %v1237_v47, 1  ;;  %v1899_v47 = vld [vmem:[%s4253_s10 + $0x128] sm:$0xff] }
 0x4df   :  { %3135 = vmatpush3.bf16.msra.mxu0 %v4047_v28  ;;  %2625 = vmatprep.mubr.f32.mxu0 %v1238_v39  ;;  %v1254_v0 = vsel %vm78_vm1, %v1248_v54, %v1249_v46  ;;  %v1253_v1 = vsel %vm78_vm1, %v1249_v46, %v1250_v55  ;;  %v1278_v28 = vld [vmem:[%s4253_s10 + $0x30] sm:$0xff] }
 0x4e0   :  { %3137 = vmatprep.subr.bf16.mxu0 %v3136_v3  ;;  %v1255_v42 = vsel %vm78_vm1, %v1251_v41, %v1248_v54  ;;  %v1252_v31 = vsel %vm78_vm1, %v1250_v55, %v1251_v41  ;;  %v1266_v6 = vsel %vm111_vm0, %v1260_v43, %v1261_v63  ;;  %v4094_v7 = vsel %vm111_vm0, %v1261_v63, %v1262_v61  ;;  %v1904_v46 = vld [vmem:[%s4253_s10 + $0x150] sm:$0xff]  ;;  %v1905_v55 = vld [vmem:[%s4253_s10 + $0x158] sm:$0xff] }
 0x4e1   :  { %v1256_v4 = vmul.f32 %v1255_v42, %v3619_v50  ;;  %v4098_v9 = vsel %vm111_vm0, %v1262_v61, %v1263_v30  ;;  %v4102_v50 = vsel %vm111_vm0, %v1263_v30, %v1260_v43  ;;  %v3144_v49 = vpack.c.bf16 %v1279_v5, %v1278_v28  ;;  %v1907_v61 = vld [vmem:[%s4253_s10 + $0x168] sm:$0xff]  ;;  %v1908_v30 = vld [vmem:[%s4253_s10 + $0x170] sm:$0xff]  ;;  %v1909_v63 = vld [vmem:[%s4253_s10 + $0x178] sm:$0xff] }
 0x4e2   :  { %2626 = vmatmul.mubr.f32.gmra.mrb[14].mxu0 %v1239_v56  ;;  %v1257_v35 = vmul.f32 %v1254_v0, %v3633_v57  ;;  %v1258_v52 = vmul.f32 %v1253_v1, %v3621_v51  ;;  %v1259_v39 = vmul.f32 %v1252_v31, %v3635_v58  ;;  %v3172_v56 = vpack.c.bf16 %v1899_v47, %v1898_v38  ;;  %v1900_v51 = vld [vmem:[%s4253_s10 + $0x130] sm:$0xff]  ;;  %v1902_v58 = vld [vmem:[%s4253_s10 + $0x140] sm:$0xff] }
 0x4e3   :  { %3139 = vmatpush3.bf16.msra.mxu0 %v3136_v3  ;;  %2660 = vmatprep.mubr.f32.mxu0 %v1256_v4  ;;  %v1268_v57 = vmul.f32 %v1266_v6, %v3647_v62  ;;  %v1901_v3 = vld [vmem:[%s4253_s10 + $0x138] sm:$0xff]  ;;  %v1903_v62 = vld [vmem:[%s4253_s10 + $0x148] sm:$0xff]  ;;  %v3184_v40 = vpack.c.bf16 %v1905_v55, %v1904_v46  ;;  %v3188_v41 = vpack.c.bf16 %v1907_v61, %v1906_v60  ;;  %v1779_v38 = vld [vmem:[%s4257_s12] sm:$0x1] }
 0x4e4   :  { %3141 = vmatprep.subr.bf16.mxu0 %v3140_v2  ;;  %v3176_v54 = vpack.c.bf16 %v1901_v3, %v1900_v51  ;;  %v3180_v43 = vpack.c.bf16 %v1903_v62, %v1902_v58  ;;  %v3192_v0 = vpack.c.bf16 %v1909_v63, %v1908_v30  ;;  %v1269_v1 = vmul.f32 %v4094_v7, %v3681_v15 }
 0x4e5   :  { %v1270_v42 = vmul.f32 %v4098_v9, %v3683_v18 }
 0x4e7   :  { %3143 = vmatpush3.bf16.msra.mxu0 %v3140_v2  ;;  %v1271_v2 = vmul.f32 %v4102_v50, %v3690_v21 }
 0x4e8   :  { %3145 = vmatprep.subr.bf16.mxu0 %v3144_v49 }
 0x4eb   :  { %3147 = vmatpush3.bf16.msra.mxu0 %v3144_v49 }
 0x4ec   :  { %3149 = vmatprep.subr.bf16.mxu0 %v3148_v12 }
 0x4ef   :  { %3151 = vmatpush3.bf16.msra.mxu0 %v3148_v12 }
 0x4f0   :  { %3153 = vmatprep.subr.bf16.mxu0 %v3152_v13 }
 0x4f3   :  { %3155 = vmatpush3.bf16.msra.mxu0 %v3152_v13 }
 0x4f4   :  { %3157 = vmatprep.subr.bf16.mxu0 %v3156_v19 }
 0x4f7   :  { %3159 = vmatpush3.bf16.msra.mxu0 %v3156_v19 }
 0x4f8   :  { %3161 = vmatprep.subr.bf16.mxu0 %v3160_v25 }
 0x4fb   :  { %3163 = vmatpush3.bf16.msra.mxu0 %v3160_v25 }
 0x4fc   :  { %3165 = vmatprep.subr.bf16.mxu0 %v3164_v32 }
 0x4fe   :  { %2661 = vmatmul.mubr.f32.vlgmr.msra.gmra.mrb[12].mxu0 %v1257_v35  ;;  %v1775_v35 = vld [vmem:[%s4256_s11] sm:$0x1] }
 0x4ff   :  { %2663 = vmatprep.mubr.f32.mxu0 %v1258_v52  ;;  %3167 = vmatpush3.bf16.msra.mxu0 %v3164_v32 }
 0x500   :  { %3169 = vmatprep.subr.bf16.mxu0 %v3168_v36 }
 0x502   :  { %2664 = vmatmul.mubr.f32.gmra.mrb[14].mxu0 %v1259_v39 }
 0x503   :  { %3171 = vmatpush3.bf16.msra.mxu0 %v3168_v36  ;;  %2698 = vmatprep.mubr.f32.mxu0 %v1268_v57 }
 0x504   :  { %3173 = vmatprep.subr.bf16.mxu0 %v3172_v56 }
 0x507   :  { %3175 = vmatpush3.bf16.msra.mxu0 %v3172_v56 }
 0x508   :  { %3177 = vmatprep.subr.bf16.mxu0 %v3176_v54 }
 0x50b   :  { %3179 = vmatpush3.bf16.msra.mxu0 %v3176_v54 }
 0x50c   :  { %3181 = vmatprep.subr.bf16.mxu0 %v3180_v43 }
 0x50f   :  { %3183 = vmatpush3.bf16.msra.mxu0 %v3180_v43 }
 0x510   :  { %3185 = vmatprep.subr.bf16.mxu0 %v3184_v40 }
 0x513   :  { %3187 = vmatpush3.bf16.msra.mxu0 %v3184_v40 }
 0x514   :  { %3189 = vmatprep.subr.bf16.mxu0 %v3188_v41 }
 0x517   :  { %3191 = vmatpush3.bf16.msra.mxu0 %v3188_v41 }
 0x518   :  { %3193 = vmatprep.subr.bf16.mxu0 %v3192_v0 }
 0x51b   :  { %3195 = vmatpush3.bf16.msra.mxu0 %v3192_v0 }
 0x51e   :  { %2699 = vmatmul.mubr.f32.vlgmr.msra.gmra.mrb[12].mxu0 %v1269_v1 }
 0x51f   :  { %2701 = vmatprep.mubr.f32.mxu0 %v1270_v42 }
 0x522   :  { %2702 = vmatmul.mubr.f32.gmra.mrb[14].mxu0 %v1271_v2 }
 0x5f1   :  { %v4186_v31 = vpop.f32.mrb[12].mxu0 }
 0x5f2   :  { %v4188_v4 = vpop.f32.mrb[13].mxu0 }
 0x5f3   :  { %2736 = vmatprep.mubr.f32.mxu1 %v4188_v4  ;;  %v1675_v18 = vmul.f32 %v4188_v4, %v4188_v4 }
 0x5f4   :  { %2737 = vmatmul.mubr.f32.vlgmr.msra.gmra.mrb[12].mxu1 %v4186_v31 }
 0x5f5   :  { %3231 = vmatpush3.bf16.msra.mxu1 %v3523_v8  ;;  %v4193_v15 = vpop.f32.mrb[14].mxu0  ;;  %v1676_v8 = vmul.f32 %v4186_v31, %v4186_v31 }
 0x5f6   :  { %v4195_v28 = vpop.f32.mrb[15].mxu0  ;;  %3233 = vmatprep.subr.bf16.mxu1 %v3528_v10 }
 0x5f7   :  { %2739 = vmatprep.mubr.f32.mxu1 %v4195_v28 }
 0x5f8   :  { %2740 = vmatmul.mubr.f32.gmra.mrb[14].mxu1 %v4193_v15 }
 0x5f9   :  { %3235 = vmatpush3.bf16.msra.mxu1 %v3528_v10  ;;  %2774 = vmatprep.mubr.f32.mxu1 %v1675_v18  ;;  %v1677_v10 = vmul.f32 %v4195_v28, %v4195_v28 }
 0x5fa   :  { %3237 = vmatprep.subr.bf16.mxu1 %v3545_v17 }
 0x5fd   :  { %3239 = vmatpush3.bf16.msra.mxu1 %v3545_v17  ;;  %v1678_v17 = vmul.f32 %v4193_v15, %v4193_v15 }
 0x5fe   :  { %3241 = vmatprep.subr.bf16.mxu1 %v3561_v23 }
 0x601   :  { %3243 = vmatpush3.bf16.msra.mxu1 %v3561_v23 }
 0x602   :  { %3245 = vmatprep.subr.bf16.mxu1 %v3577_v29 }
 0x605   :  { %3247 = vmatpush3.bf16.msra.mxu1 %v3577_v29 }
 0x606   :  { %3249 = vmatprep.subr.bf16.mxu1 %v3593_v37 }
 0x609   :  { %3251 = vmatpush3.bf16.msra.mxu1 %v3593_v37 }
 0x60a   :  { %3253 = vmatprep.subr.bf16.mxu1 %v3603_v44 }
 0x60d   :  { %3255 = vmatpush3.bf16.msra.mxu1 %v3603_v44 }
 0x60e   :  { %3257 = vmatprep.subr.bf16.mxu1 %v3613_v48 }
 0x611   :  { %3259 = vmatpush3.bf16.msra.mxu1 %v3613_v48 }
 0x614   :  { %2775 = vmatmul.mubr.f32.vlgmr.msra.gmra.mrb[16].mxu1 %v1676_v8 }
 0x615   :  { %2777 = vmatprep.mubr.f32.mxu1 %v1677_v10 }
 0x618   :  { %2778 = vmatmul.mubr.f32.gmra.mrb[18].mxu1 %v1678_v17 }
 0x6c7   :  { %v2738_v23 = vpop.f32.mrb[12].mxu1 }
 0x6c8   :  { %v1647_v29 = vpop.f32.mrb[13].mxu1 }
 0x6c9   :  { %v1666_v37 = vadd.f32 %v2738_v23, %v1647_v29 }
 0x6cb   :  { %v2741_v44 = vpop.f32.mrb[14].mxu1 }
 0x6cc   :  { %v1657_v21 = vpop.f32.mrb[15].mxu1 }
 0x6cd   :  { %v1667_v5 = vadd.f32 %v1666_v37, %v1657_v21 }
 0x6cf   :  { %v1668_v6 = vadd.f32 %v2741_v44, %v1667_v5 }
 0x6d1   :  { %v1669_v48 = vrot.slane %v1668_v6, 4 }
 0x6d3   :  { %v1670_v7 = vadd.f32 %v1669_v48, %v1668_v6 }
 0x6d5   :  { %v1671_v11 = vrot.slane %v1670_v7, 2 }
 0x6d7   :  { %v1672_v24 = vadd.f32 %v1671_v11, %v1670_v7 }
 0x6d9   :  { %v1673_v14 = vrot.slane %v1672_v24, 1 }
 0x6db   :  { %v1674_v22 = vadd.f32 %v1673_v14, %v1672_v24 }
 0x6dd   :  { %v1773_v27 = vmul.f32 %v1674_v22, %v1674_v22 }
 0x6e7   :  { %v2776_v9 = vpop.f32.mrb[16].mxu1 }
 0x6e8   :  { %v1745_v50 = vpop.f32.mrb[17].mxu1 }
 0x6e9   :  { %v1764_v49 = vadd.f32 %v2776_v9, %v1745_v50 }
 0x6eb   :  { %v2779_v45 = vpop.f32.mrb[18].mxu1 }
 0x6ec   :  { %v1755_v12 = vpop.f32.mrb[19].mxu1 }
 0x6ed   :  { %v1765_v16 = vadd.f32 %v1764_v49, %v1755_v12 }
 0x6ef   :  { %v1766_v13 = vadd.f32 %v2779_v45, %v1765_v16 }
 0x6f1   :  { %v1767_v53 = vrot.slane %v1766_v13, 4 }
 0x6f3   :  { %v1768_v19 = vadd.f32 %v1767_v53, %v1766_v13 }
 0x6f5   :  { %v1769_v20 = vrot.slane %v1768_v19, 2 }
 0x6f7   :  { %v1770_v25 = vadd.f32 %v1769_v20, %v1768_v19 }
 0x6f9   :  { %v1771_v26 = vrot.slane %v1770_v25, 1 }
 0x6fb   :  { %v1772_v32 = vadd.f32 %v1771_v26, %v1770_v25 }
 0x6fd   :  { %v1774_v33 = vsub.f32 %v1772_v32, %v1773_v27 }
 0x6ff   :  { %v1776_v34 = vadd.f32 1e-05, %v1774_v33 }
 0x701   :  { %3291 = vrsqrt.f32 %v1776_v34 }
 0x70b   :  { %v3292_v36 = vpop.eup %3291 }
 0x70c   :  { %v1778_v52 = vmul.f32 %v3292_v36, %v1775_v35 }
 0x70e   :  { %v1780_v47 = vmul.f32 %v1778_v52, %v1674_v22  ;;  %v1786_v39 = vrot.slane %v1778_v52, %v3806_v59 }
 0x710   :  { %v1781_v56 = vsub.f32 %v1779_v38, %v1780_v47  ;;  %v1788_v57 = vmul.f32 %v1786_v39, %v4188_v4  ;;  %v1789_v51 = vmul.f32 %v4186_v31, %v1786_v39  ;;  %v1790_v3 = vmul.f32 %v1786_v39, %v4195_v28 }
 0x711   :  { %v1791_v54 = vmul.f32 %v4193_v15, %v1786_v39 }
 0x712   :  { %v1796_v58 = vrot.slane %v1781_v56, %v3806_v59 }
 0x714   :  { %v1798_v62 = vadd.f32 %v1796_v58, %v1788_v57  ;;  %v1799_v43 = vadd.f32 %v1796_v58, %v1789_v51  ;;  %v1800_v46 = vadd.f32 %v1796_v58, %v1790_v3  ;;  %v1801_v55 = vadd.f32 %v1796_v58, %v1791_v54 }
 0x716   :  { %v1802_v40 = vmax.f32 %v1798_v62, 0.0  ;;  %v1803_v60 = vmax.f32 %v1799_v43, 0.0  ;;  %v1804_v61 = vmax.f32 %v1800_v46, 0.0  ;;  %v1805_v41 = vmax.f32 %v1801_v55, 0.0 }
 0x718   :  { %1806 = vst [vmem:[%s4258_s13] sm:$0xff] %v1802_v40  ;;  %1807 = vst [vmem:[%s4258_s13 + $0x8] sm:$0xff] %v1803_v60 }
 0x719   :  { %1808 = vst [vmem:[%s4258_s13 + $0x10] sm:$0xff] %v1804_v61  ;;  %1809 = vst [vmem:[%s4258_s13 + $0x18] sm:$0xff] %v1805_v41 }

</bundles_post_ra>
